<compile_context>
chip_gen: v6e
topology: v6e:2x2x1
jax: 0.10.0
libtpu: 0.0.40
codegen_flags: <defaults>
</compile_context>

<pallas_src>
import jax
import jax.numpy as jnp
from jax.experimental import pallas as pl
from jax.experimental.pallas import tpu as pltpu

EPS = 1e-5


def basic_block_kernel(x_ref, w1_ref, b1_ref, g1_ref, be1_ref,
                       w2_ref, b2_ref, g2_ref, be2_ref, sel_ref, selT_ref,
                       out_ref, pad_ref, patch_ref):
    """Fused conv1 -> bn1 -> relu -> conv2 -> bn2 -> (+x) -> relu.

    Layouts (lane-dense: (W, C) folded onto the lane axis):
      x_ref    : (N, H, W*C)        f32   folded NHWC input
      w*_ref   : (9*W*C, W*C)       bf16  block-banded 3x3 conv weights
      b*/g*/be*: (1, C)             f32   conv bias / BN gamma / BN beta
      sel_ref  : (C, W*C)           f32   per-channel -> per-column broadcast
      selT_ref : (W*C, C)           f32   per-column  -> per-channel reduce
      out_ref  : (N*H, W*C)         f32   folded output (unmasked lane store)
      pad_ref  : (N, H+2, (W+2)*C)  f32   zero-padded staging (shared, both convs)
      patch_ref: (N*H, 9*W*C)       bf16  row-wise im2col patches (shared)
    """
    N, H, WC = x_ref.shape
    C = b1_ref.shape[1]
    W = WC // C
    NH = N * H
    inv_m = 1.0 / float(N * H * W)

    # ---- zero only the halo of the shared padded staging buffer (once) ----
    pad_ref[:, 0:1, :] = jnp.zeros((N, 1, (W + 2) * C), jnp.float32)
    pad_ref[:, H + 1:H + 2, :] = jnp.zeros((N, 1, (W + 2) * C), jnp.float32)
    pad_ref[:, 1:H + 1, 0:C] = jnp.zeros((N, H, C), jnp.float32)
    pad_ref[:, 1:H + 1, (W + 1) * C:(W + 2) * C] = jnp.zeros((N, H, C),
                                                             jnp.float32)

    def conv3x3(w_ref, b_ref):
        # Row-wise im2col: each of the 9 taps is a lane-dense (N*H, W*C) slab
        # (a pure slice of the padded buffer), staged once as a single
        # (N*H, 9*W*C) bf16 block, then contracted in ONE MXU matmul against
        # the block-banded bf16 weights with f32 accumulation.
        for ky in range(3):
            for kx in range(3):
                t = ky * 3 + kx
                slab = pad_ref[:, ky:ky + H, kx * C:kx * C + WC]
                patch_ref[:, t * WC:(t + 1) * WC] = (
                    slab.reshape(NH, WC).astype(jnp.bfloat16))
        y = jnp.dot(patch_ref[...], w_ref[...],
                    preferred_element_type=jnp.float32)          # (N*H, W*C)
        # conv bias: per-channel -> per-column broadcast via a tiny MXU matmul
        return y + jnp.dot(b_ref[...], sel_ref[...],
                           preferred_element_type=jnp.float32)

    def batchnorm(y, g_ref, be_ref):
        # Training-mode BN: biased batch statistics over (N, H, W) per channel.
        # sum / sum-of-squares taken in one pass while y is live; the channel
        # reduce and the channel broadcast run as tiny selector matmuls.
        col_s = jnp.sum(y, axis=0, keepdims=True)                # (1, W*C)
        col_ss = jnp.sum(y * y, axis=0, keepdims=True)           # (1, W*C)
        s_c = jnp.dot(col_s, selT_ref[...],
                      preferred_element_type=jnp.float32)        # (1, C)
        ss_c = jnp.dot(col_ss, selT_ref[...],
                       preferred_element_type=jnp.float32)       # (1, C)
        mean = s_c * inv_m
        var = ss_c * inv_m - mean * mean
        scale = g_ref[...] * jax.lax.rsqrt(var + EPS)            # (1, C)
        shift = be_ref[...] - mean * scale                       # (1, C)
        scale_t = jnp.dot(scale, sel_ref[...],
                          preferred_element_type=jnp.float32)    # (1, W*C)
        shift_t = jnp.dot(shift, sel_ref[...],
                          preferred_element_type=jnp.float32)    # (1, W*C)
        return y * scale_t + shift_t                             # lane-dense

    # ---- conv1 -> bn1 -> relu ----
    pad_ref[:, 1:H + 1, C:(W + 1) * C] = x_ref[...]
    h = jnp.maximum(batchnorm(conv3x3(w1_ref, b1_ref), g1_ref, be1_ref), 0.0)

    # ---- conv2 -> bn2 (reuse the same staging + patch buffers) ----
    pad_ref[:, 1:H + 1, C:(W + 1) * C] = h.reshape(N, H, WC)
    h2 = batchnorm(conv3x3(w2_ref, b2_ref), g2_ref, be2_ref)

    # ---- identity shortcut + relu, lane-dense (unmasked) output store ----
    res = x_ref[...].reshape(NH, WC)
    out_ref[...] = jnp.maximum(h2 + res, 0.0)


def _expand_conv_weights(w_hwio, width):
    """(3,3,C,C) HWIO -> (9*W*C, W*C) bf16 block-banded matrix.

    Row (t*W + x)*C + ci (t = ky*3 + kx) maps to output column x*C + co, so the
    row-wise im2col patch block contracts to a lane-dense conv output in one
    matmul."""
    eye = jnp.eye(width, dtype=w_hwio.dtype)
    blocks = [jnp.kron(eye, w_hwio[ky, kx])
              for ky in range(3) for kx in range(3)]
    return jnp.concatenate(blocks, axis=0).astype(jnp.bfloat16)


@jax.jit
def basic_block_forward(x_nchw, w1, b1, g1, be1, w2, b2, g2, be2):
    """x_nchw: (N, C, H, W) float32 — same convention as the PyTorch module."""
    N, C, H, W = x_nchw.shape
    WC = W * C

    # Layout plumbing (XLA side): NCHW -> NHWC -> fold (W, C) onto the lanes.
    x_folded = jnp.transpose(x_nchw, (0, 2, 3, 1)).reshape(N, H, WC)
    x_folded = x_folded.astype(jnp.float32)

    w1e = _expand_conv_weights(w1, W)
    w2e = _expand_conv_weights(w2, W)
    row = lambda v: v.reshape(1, C).astype(jnp.float32)

    # per-channel <-> per-column (folded layout) selector matrices
    sel = jnp.tile(jnp.eye(C, dtype=jnp.float32), (1, W))        # (C, W*C)
    selT = jnp.transpose(sel)                                    # (W*C, C)

    vmem = pl.BlockSpec(memory_space=pltpu.MemorySpace.VMEM)
    flops = 2 * 2 * (N * H) * (9 * WC) * WC                      # two conv matmuls
    bytes_accessed = (4 * (x_folded.size + N * H * WC)           # x + out (f32)
                      + 2 * (w1e.size + w2e.size)                # bf16 weights
                      + 4 * (sel.size + selT.size) + 4 * 8 * C)  # selectors+params

    out_folded = pl.pallas_call(
        basic_block_kernel,
        out_shape=jax.ShapeDtypeStruct((N * H, WC), jnp.float32),
        in_specs=[vmem] * 11,
        out_specs=vmem,
        scratch_shapes=[
            pltpu.VMEM((N, H + 2, (W + 2) * C), jnp.float32),    # padded staging
            pltpu.VMEM((N * H, 9 * WC), jnp.bfloat16),           # im2col patches
        ],
        compiler_params=pltpu.CompilerParams(
            vmem_limit_bytes=32 * 1024 * 1024),
        cost_estimate=pl.CostEstimate(flops=int(flops),
                                      transcendentals=2 * C,
                                      bytes_accessed=int(bytes_accessed)),
    )(x_folded, w1e, row(b1), row(g1), row(be1),
      w2e, row(b2), row(g2), row(be2), sel, selT)

    # Unfold: (N*H, W*C) -> (N, H, W, C) -> NCHW (wrapper-side layout plumbing).
    return jnp.transpose(out_folded.reshape(N, H, W, C), (0, 3, 1, 2))


def reference_forward(x, w1, b1, g1, be1, w2, b2, g2, be2):
    """Pure-JAX/XLA reference (NCHW, f32) matching the PyTorch forward."""
    def conv(v, w, b):
        y = jax.lax.conv_general_dilated(
            v, w, window_strides=(1, 1), padding="SAME",
            dimension_numbers=("NCHW", "HWIO", "NCHW"),
            precision=jax.lax.Precision.HIGHEST)
        return y + b.reshape(1, -1, 1, 1)

    def bn(v, g, be):
        mean = jnp.mean(v, axis=(0, 2, 3), keepdims=True)
        var = jnp.mean((v - mean) ** 2, axis=(0, 2, 3), keepdims=True)
        return ((v - mean) * jax.lax.rsqrt(var + EPS)
                * g.reshape(1, -1, 1, 1) + be.reshape(1, -1, 1, 1))

    out = jax.nn.relu(bn(conv(x, w1, b1), g1, be1))
    out = bn(conv(out, w2, b2), g2, be2)
    return jax.nn.relu(out + x)


if __name__ == "__main__":
    # BasicBlock(in_planes=8, planes=8, stride=1); W*C = 128 -> lane-dense fold.
    N, C, H, W = 2, 8, 16, 16

    key = jax.random.PRNGKey(0)
    ks = jax.random.split(key, 9)
    fan_in = C * 3 * 3
    scale = 1.0 / jnp.sqrt(fan_in)

    x = jax.random.normal(ks[0], (N, C, H, W), jnp.float32)
    # Conv weights stored in HWIO: (kh, kw, Cin, Cout)
    w1 = jax.random.uniform(ks[1], (3, 3, C, C), jnp.float32, -scale, scale)
    b1 = jax.random.uniform(ks[2], (C,), jnp.float32, -scale, scale)
    w2 = jax.random.uniform(ks[3], (3, 3, C, C), jnp.float32, -scale, scale)
    b2 = jax.random.uniform(ks[4], (C,), jnp.float32, -scale, scale)
    # BatchNorm affine params (PyTorch default is gamma=1, beta=0; perturb
    # deterministically so the affine path is exercised).
    g1 = 1.0 + 0.1 * jax.random.normal(ks[5], (C,), jnp.float32)
    be1 = 0.1 * jax.random.normal(ks[6], (C,), jnp.float32)
    g2 = 1.0 + 0.1 * jax.random.normal(ks[7], (C,), jnp.float32)
    be2 = 0.1 * jax.random.normal(ks[8], (C,), jnp.float32)

    out = basic_block_forward(x, w1, b1, g1, be1, w2, b2, g2, be2)
    out = jax.block_until_ready(out)

    ref = reference_forward(x, w1, b1, g1, be1, w2, b2, g2, be2)
    assert out.shape == (N, C, H, W)
    # bf16 MXU operands (f32 accumulation) across two convs + BN rescaling
    # -> compare against the f32 reference with a matching tolerance.
    max_err = float(jnp.max(jnp.abs(out - ref)))
    assert jnp.allclose(out, ref, atol=5e-2, rtol=5e-2), (
        f"mismatch vs reference: max abs err {max_err}")

    print("KERNEL_OK")
</pallas_src>

<mosaic_0001>
module attributes {stable_mosaic.version = 11 : i64} {
  func.func @basic_block_kernel(%arg0: memref<2x16x128xf32, #tpu.memory_space<vmem>>, %arg1: memref<1152x128xbf16, #tpu.memory_space<vmem>>, %arg2: memref<1x8xf32, #tpu.memory_space<vmem>>, %arg3: memref<1x8xf32, #tpu.memory_space<vmem>>, %arg4: memref<1x8xf32, #tpu.memory_space<vmem>>, %arg5: memref<1152x128xbf16, #tpu.memory_space<vmem>>, %arg6: memref<1x8xf32, #tpu.memory_space<vmem>>, %arg7: memref<1x8xf32, #tpu.memory_space<vmem>>, %arg8: memref<1x8xf32, #tpu.memory_space<vmem>>, %arg9: memref<8x128xf32, #tpu.memory_space<vmem>>, %arg10: memref<128x8xf32, #tpu.memory_space<vmem>>, %arg11: memref<32x128xf32, #tpu.memory_space<vmem>>, %arg12: memref<2x18x144xf32, #tpu.memory_space<vmem>>, %arg13: memref<32x1152xbf16, #tpu.memory_space<vmem>>) attributes {dimension_semantics = [], scalar_prefetch = 0 : i64, scratch_operands = 2 : i64, tpu.core_type = #tpu.core_type<tc>} {
    %cst = arith.constant 0.000000e+00 : f32
    %0 = vector.broadcast %cst : f32 to vector<2x1x144xf32>
    %c0 = arith.constant 0 : index
    %c0_0 = arith.constant 0 : index
    %c0_1 = arith.constant 0 : index
    %1 = vector.load %arg12[%c0, %c0_0, %c0_1] : memref<2x18x144xf32, #tpu.memory_space<vmem>>, vector<2x1x144xf32>
    tpu.vector_store %arg12[%c0, %c0_0, %c0_1], %0 {strides = array<i32>} : memref<2x18x144xf32, #tpu.memory_space<vmem>>, vector<2x1x144xf32>,
    %cst_2 = arith.constant 0.000000e+00 : f32
    %2 = vector.broadcast %cst_2 : f32 to vector<2x1x144xf32>
    %c0_3 = arith.constant 0 : index
    %c17 = arith.constant 17 : index
    %c0_4 = arith.constant 0 : index
    %3 = vector.load %arg12[%c0_3, %c17, %c0_4] : memref<2x18x144xf32, #tpu.memory_space<vmem>>, vector<2x1x144xf32>
    tpu.vector_store %arg12[%c0_3, %c17, %c0_4], %2 {strides = array<i32>} : memref<2x18x144xf32, #tpu.memory_space<vmem>>, vector<2x1x144xf32>,
    %cst_5 = arith.constant 0.000000e+00 : f32
    %4 = vector.broadcast %cst_5 : f32 to vector<2x16x8xf32>
    %c0_6 = arith.constant 0 : index
    %c1 = arith.constant 1 : index
    %c0_7 = arith.constant 0 : index
    %5 = vector.load %arg12[%c0_6, %c1, %c0_7] : memref<2x18x144xf32, #tpu.memory_space<vmem>>, vector<2x16x8xf32>
    tpu.vector_store %arg12[%c0_6, %c1, %c0_7], %4 {strides = array<i32>} : memref<2x18x144xf32, #tpu.memory_space<vmem>>, vector<2x16x8xf32>,
    %cst_8 = arith.constant 0.000000e+00 : f32
    %6 = vector.broadcast %cst_8 : f32 to vector<2x16x8xf32>
    %c0_9 = arith.constant 0 : index
    %c1_10 = arith.constant 1 : index
    %c136 = arith.constant 136 : index
    %7 = vector.load %arg12[%c0_9, %c1_10, %c136] : memref<2x18x144xf32, #tpu.memory_space<vmem>>, vector<2x16x8xf32>
    tpu.vector_store %arg12[%c0_9, %c1_10, %c136], %6 {strides = array<i32>} : memref<2x18x144xf32, #tpu.memory_space<vmem>>, vector<2x16x8xf32>,
    %c0_11 = arith.constant 0 : index
    %c0_12 = arith.constant 0 : index
    %c0_13 = arith.constant 0 : index
    %8 = vector.load %arg0[%c0_11, %c0_12, %c0_13] : memref<2x16x128xf32, #tpu.memory_space<vmem>>, vector<2x16x128xf32>
    %c0_14 = arith.constant 0 : index
    %c1_15 = arith.constant 1 : index
    %c8 = arith.constant 8 : index
    %9 = vector.load %arg12[%c0_14, %c1_15, %c8] : memref<2x18x144xf32, #tpu.memory_space<vmem>>, vector<2x16x128xf32>
    tpu.vector_store %arg12[%c0_14, %c1_15, %c8], %8 {strides = array<i32>} : memref<2x18x144xf32, #tpu.memory_space<vmem>>, vector<2x16x128xf32>,
    %c0_16 = arith.constant 0 : index
    %c0_17 = arith.constant 0 : index
    %c0_18 = arith.constant 0 : index
    %10 = vector.load %arg12[%c0_16, %c0_17, %c0_18] : memref<2x18x144xf32, #tpu.memory_space<vmem>>, vector<2x16x128xf32>
    %11 = vector.shape_cast %10 : vector<2x16x128xf32> to vector<32x128xf32>
    %12 = arith.truncf %11 : vector<32x128xf32> to vector<32x128xbf16>
    %c0_19 = arith.constant 0 : index
    %c0_20 = arith.constant 0 : index
    %13 = vector.load %arg13[%c0_19, %c0_20] : memref<32x1152xbf16, #tpu.memory_space<vmem>>, vector<32x128xbf16>
    tpu.vector_store %arg13[%c0_19, %c0_20], %12 {strides = array<i32>} : memref<32x1152xbf16, #tpu.memory_space<vmem>>, vector<32x128xbf16>,
    %c0_21 = arith.constant 0 : index
    %c0_22 = arith.constant 0 : index
    %c8_23 = arith.constant 8 : index
    %14 = vector.load %arg12[%c0_21, %c0_22, %c8_23] : memref<2x18x144xf32, #tpu.memory_space<vmem>>, vector<2x16x128xf32>
    %15 = vector.shape_cast %14 : vector<2x16x128xf32> to vector<32x128xf32>
    %16 = arith.truncf %15 : vector<32x128xf32> to vector<32x128xbf16>
    %c0_24 = arith.constant 0 : index
    %c128 = arith.constant 128 : index
    %17 = vector.load %arg13[%c0_24, %c128] : memref<32x1152xbf16, #tpu.memory_space<vmem>>, vector<32x128xbf16>
    tpu.vector_store %arg13[%c0_24, %c128], %16 {strides = array<i32>} : memref<32x1152xbf16, #tpu.memory_space<vmem>>, vector<32x128xbf16>,
    %c0_25 = arith.constant 0 : index
    %c0_26 = arith.constant 0 : index
    %c16 = arith.constant 16 : index
    %18 = vector.load %arg12[%c0_25, %c0_26, %c16] : memref<2x18x144xf32, #tpu.memory_space<vmem>>, vector<2x16x128xf32>
    %19 = vector.shape_cast %18 : vector<2x16x128xf32> to vector<32x128xf32>
    %20 = arith.truncf %19 : vector<32x128xf32> to vector<32x128xbf16>
    %c0_27 = arith.constant 0 : index
    %c256 = arith.constant 256 : index
    %21 = vector.load %arg13[%c0_27, %c256] : memref<32x1152xbf16, #tpu.memory_space<vmem>>, vector<32x128xbf16>
    tpu.vector_store %arg13[%c0_27, %c256], %20 {strides = array<i32>} : memref<32x1152xbf16, #tpu.memory_space<vmem>>, vector<32x128xbf16>,
    %c0_28 = arith.constant 0 : index
    %c1_29 = arith.constant 1 : index
    %c0_30 = arith.constant 0 : index
    %22 = vector.load %arg12[%c0_28, %c1_29, %c0_30] : memref<2x18x144xf32, #tpu.memory_space<vmem>>, vector<2x16x128xf32>
    %23 = vector.shape_cast %22 : vector<2x16x128xf32> to vector<32x128xf32>
    %24 = arith.truncf %23 : vector<32x128xf32> to vector<32x128xbf16>
    %c0_31 = arith.constant 0 : index
    %c384 = arith.constant 384 : index
    %25 = vector.load %arg13[%c0_31, %c384] : memref<32x1152xbf16, #tpu.memory_space<vmem>>, vector<32x128xbf16>
    tpu.vector_store %arg13[%c0_31, %c384], %24 {strides = array<i32>} : memref<32x1152xbf16, #tpu.memory_space<vmem>>, vector<32x128xbf16>,
    %c0_32 = arith.constant 0 : index
    %c1_33 = arith.constant 1 : index
    %c8_34 = arith.constant 8 : index
    %26 = vector.load %arg12[%c0_32, %c1_33, %c8_34] : memref<2x18x144xf32, #tpu.memory_space<vmem>>, vector<2x16x128xf32>
    %27 = vector.shape_cast %26 : vector<2x16x128xf32> to vector<32x128xf32>
    %28 = arith.truncf %27 : vector<32x128xf32> to vector<32x128xbf16>
    %c0_35 = arith.constant 0 : index
    %c512 = arith.constant 512 : index
    %29 = vector.load %arg13[%c0_35, %c512] : memref<32x1152xbf16, #tpu.memory_space<vmem>>, vector<32x128xbf16>
    tpu.vector_store %arg13[%c0_35, %c512], %28 {strides = array<i32>} : memref<32x1152xbf16, #tpu.memory_space<vmem>>, vector<32x128xbf16>,
    %c0_36 = arith.constant 0 : index
    %c1_37 = arith.constant 1 : index
    %c16_38 = arith.constant 16 : index
    %30 = vector.load %arg12[%c0_36, %c1_37, %c16_38] : memref<2x18x144xf32, #tpu.memory_space<vmem>>, vector<2x16x128xf32>
    %31 = vector.shape_cast %30 : vector<2x16x128xf32> to vector<32x128xf32>
    %32 = arith.truncf %31 : vector<32x128xf32> to vector<32x128xbf16>
    %c0_39 = arith.constant 0 : index
    %c640 = arith.constant 640 : index
    %33 = vector.load %arg13[%c0_39, %c640] : memref<32x1152xbf16, #tpu.memory_space<vmem>>, vector<32x128xbf16>
    tpu.vector_store %arg13[%c0_39, %c640], %32 {strides = array<i32>} : memref<32x1152xbf16, #tpu.memory_space<vmem>>, vector<32x128xbf16>,
    %c0_40 = arith.constant 0 : index
    %c2 = arith.constant 2 : index
    %c0_41 = arith.constant 0 : index
    %34 = vector.load %arg12[%c0_40, %c2, %c0_41] : memref<2x18x144xf32, #tpu.memory_space<vmem>>, vector<2x16x128xf32>
    %35 = vector.shape_cast %34 : vector<2x16x128xf32> to vector<32x128xf32>
    %36 = arith.truncf %35 : vector<32x128xf32> to vector<32x128xbf16>
    %c0_42 = arith.constant 0 : index
    %c768 = arith.constant 768 : index
    %37 = vector.load %arg13[%c0_42, %c768] : memref<32x1152xbf16, #tpu.memory_space<vmem>>, vector<32x128xbf16>
    tpu.vector_store %arg13[%c0_42, %c768], %36 {strides = array<i32>} : memref<32x1152xbf16, #tpu.memory_space<vmem>>, vector<32x128xbf16>,
    %c0_43 = arith.constant 0 : index
    %c2_44 = arith.constant 2 : index
    %c8_45 = arith.constant 8 : index
    %38 = vector.load %arg12[%c0_43, %c2_44, %c8_45] : memref<2x18x144xf32, #tpu.memory_space<vmem>>, vector<2x16x128xf32>
    %39 = vector.shape_cast %38 : vector<2x16x128xf32> to vector<32x128xf32>
    %40 = arith.truncf %39 : vector<32x128xf32> to vector<32x128xbf16>
    %c0_46 = arith.constant 0 : index
    %c896 = arith.constant 896 : index
    %41 = vector.load %arg13[%c0_46, %c896] : memref<32x1152xbf16, #tpu.memory_space<vmem>>, vector<32x128xbf16>
    tpu.vector_store %arg13[%c0_46, %c896], %40 {strides = array<i32>} : memref<32x1152xbf16, #tpu.memory_space<vmem>>, vector<32x128xbf16>,
    %c0_47 = arith.constant 0 : index
    %c2_48 = arith.constant 2 : index
    %c16_49 = arith.constant 16 : index
    %42 = vector.load %arg12[%c0_47, %c2_48, %c16_49] : memref<2x18x144xf32, #tpu.memory_space<vmem>>, vector<2x16x128xf32>
    %43 = vector.shape_cast %42 : vector<2x16x128xf32> to vector<32x128xf32>
    %44 = arith.truncf %43 : vector<32x128xf32> to vector<32x128xbf16>
    %c0_50 = arith.constant 0 : index
    %c1024 = arith.constant 1024 : index
    %45 = vector.load %arg13[%c0_50, %c1024] : memref<32x1152xbf16, #tpu.memory_space<vmem>>, vector<32x128xbf16>
    tpu.vector_store %arg13[%c0_50, %c1024], %44 {strides = array<i32>} : memref<32x1152xbf16, #tpu.memory_space<vmem>>, vector<32x128xbf16>,
    %c0_51 = arith.constant 0 : index
    %c0_52 = arith.constant 0 : index
    %46 = vector.load %arg13[%c0_51, %c0_52] : memref<32x1152xbf16, #tpu.memory_space<vmem>>, vector<32x1152xbf16>
    %c0_53 = arith.constant 0 : index
    %c0_54 = arith.constant 0 : index
    %47 = vector.load %arg1[%c0_53, %c0_54] : memref<1152x128xbf16, #tpu.memory_space<vmem>>, vector<1152x128xbf16>
    %cst_55 = arith.constant dense<0.000000e+00> : vector<32x128xf32>
    %48 = tpu.matmul %46, %47, %cst_55 {dimension_numbers = #tpu.dot_dimension_numbers<[1], [0], [0], [1], [0, 0, 1, 1], [], []>} : vector<32x1152xbf16>, vector<1152x128xbf16>, vector<32x128xf32> -> vector<32x128xf32>
    %c0_56 = arith.constant 0 : index
    %c0_57 = arith.constant 0 : index
    %49 = vector.load %arg2[%c0_56, %c0_57] : memref<1x8xf32, #tpu.memory_space<vmem>>, vector<1x8xf32>
    %c0_58 = arith.constant 0 : index
    %c0_59 = arith.constant 0 : index
    %50 = vector.load %arg9[%c0_58, %c0_59] : memref<8x128xf32, #tpu.memory_space<vmem>>, vector<8x128xf32>
    %cst_60 = arith.constant dense<0.000000e+00> : vector<1x128xf32>
    %51 = tpu.matmul %49, %50, %cst_60 {dimension_numbers = #tpu.dot_dimension_numbers<[1], [0], [0], [1], [0, 0, 1, 1], [], []>} : vector<1x8xf32>, vector<8x128xf32>, vector<1x128xf32> -> vector<1x128xf32>
    %52 = vector.broadcast %51 : vector<1x128xf32> to vector<32x128xf32>
    %53 = arith.addf %48, %52 : vector<32x128xf32>
    %cst_61 = arith.constant dense<0.000000e+00> : vector<128xf32>
    %54 = vector.multi_reduction <add>, %53, %cst_61 [0] : vector<32x128xf32> to vector<128xf32>
    %55 = vector.shape_cast %54 : vector<128xf32> to vector<1x128xf32>
    %56 = arith.mulf %53, %53 : vector<32x128xf32>
    %cst_62 = arith.constant dense<0.000000e+00> : vector<128xf32>
    %57 = vector.multi_reduction <add>, %56, %cst_62 [0] : vector<32x128xf32> to vector<128xf32>
    %58 = vector.shape_cast %57 : vector<128xf32> to vector<1x128xf32>
    %c0_63 = arith.constant 0 : index
    %c0_64 = arith.constant 0 : index
    %59 = vector.load %arg10[%c0_63, %c0_64] : memref<128x8xf32, #tpu.memory_space<vmem>>, vector<128x8xf32>
    %cst_65 = arith.constant dense<0.000000e+00> : vector<1x8xf32>
    %60 = tpu.matmul %55, %59, %cst_65 {dimension_numbers = #tpu.dot_dimension_numbers<[1], [0], [0], [1], [0, 0, 1, 1], [], []>} : vector<1x128xf32>, vector<128x8xf32>, vector<1x8xf32> -> vector<1x8xf32>
    %c0_66 = arith.constant 0 : index
    %c0_67 = arith.constant 0 : index
    %61 = vector.load %arg10[%c0_66, %c0_67] : memref<128x8xf32, #tpu.memory_space<vmem>>, vector<128x8xf32>
    %cst_68 = arith.constant dense<0.000000e+00> : vector<1x8xf32>
    %62 = tpu.matmul %58, %61, %cst_68 {dimension_numbers = #tpu.dot_dimension_numbers<[1], [0], [0], [1], [0, 0, 1, 1], [], []>} : vector<1x128xf32>, vector<128x8xf32>, vector<1x8xf32> -> vector<1x8xf32>
    %cst_69 = arith.constant 0.001953125 : f32
    %63 = vector.broadcast %cst_69 : f32 to vector<1x8xf32>
    %64 = arith.mulf %60, %63 : vector<1x8xf32>
    %cst_70 = arith.constant 0.001953125 : f32
    %65 = vector.broadcast %cst_70 : f32 to vector<1x8xf32>
    %66 = arith.mulf %62, %65 : vector<1x8xf32>
    %67 = arith.mulf %64, %64 : vector<1x8xf32>
    %68 = arith.subf %66, %67 : vector<1x8xf32>
    %c0_71 = arith.constant 0 : index
    %c0_72 = arith.constant 0 : index
    %69 = vector.load %arg3[%c0_71, %c0_72] : memref<1x8xf32, #tpu.memory_space<vmem>>, vector<1x8xf32>
    %cst_73 = arith.constant 9.99999974E-6 : f32
    %70 = vector.broadcast %cst_73 : f32 to vector<1x8xf32>
    %71 = arith.addf %68, %70 : vector<1x8xf32>
    %72 = math.rsqrt %71 : vector<1x8xf32>
    %73 = arith.mulf %69, %72 : vector<1x8xf32>
    %c0_74 = arith.constant 0 : index
    %c0_75 = arith.constant 0 : index
    %74 = vector.load %arg4[%c0_74, %c0_75] : memref<1x8xf32, #tpu.memory_space<vmem>>, vector<1x8xf32>
    %75 = arith.mulf %64, %73 : vector<1x8xf32>
    %76 = arith.subf %74, %75 : vector<1x8xf32>
    %c0_76 = arith.constant 0 : index
    %c0_77 = arith.constant 0 : index
    %77 = vector.load %arg9[%c0_76, %c0_77] : memref<8x128xf32, #tpu.memory_space<vmem>>, vector<8x128xf32>
    %cst_78 = arith.constant dense<0.000000e+00> : vector<1x128xf32>
    %78 = tpu.matmul %73, %77, %cst_78 {dimension_numbers = #tpu.dot_dimension_numbers<[1], [0], [0], [1], [0, 0, 1, 1], [], []>} : vector<1x8xf32>, vector<8x128xf32>, vector<1x128xf32> -> vector<1x128xf32>
    %c0_79 = arith.constant 0 : index
    %c0_80 = arith.constant 0 : index
    %79 = vector.load %arg9[%c0_79, %c0_80] : memref<8x128xf32, #tpu.memory_space<vmem>>, vector<8x128xf32>
    %cst_81 = arith.constant dense<0.000000e+00> : vector<1x128xf32>
    %80 = tpu.matmul %76, %79, %cst_81 {dimension_numbers = #tpu.dot_dimension_numbers<[1], [0], [0], [1], [0, 0, 1, 1], [], []>} : vector<1x8xf32>, vector<8x128xf32>, vector<1x128xf32> -> vector<1x128xf32>
    %81 = vector.broadcast %78 : vector<1x128xf32> to vector<32x128xf32>
    %82 = arith.mulf %53, %81 : vector<32x128xf32>
    %83 = vector.broadcast %80 : vector<1x128xf32> to vector<32x128xf32>
    %84 = arith.addf %82, %83 : vector<32x128xf32>
    %cst_82 = arith.constant 0.000000e+00 : f32
    %85 = vector.broadcast %cst_82 : f32 to vector<32x128xf32>
    %86 = arith.maximumf %84, %85 : vector<32x128xf32>
    %87 = vector.shape_cast %86 : vector<32x128xf32> to vector<2x16x128xf32>
    %c0_83 = arith.constant 0 : index
    %c1_84 = arith.constant 1 : index
    %c8_85 = arith.constant 8 : index
    %88 = vector.load %arg12[%c0_83, %c1_84, %c8_85] : memref<2x18x144xf32, #tpu.memory_space<vmem>>, vector<2x16x128xf32>
    tpu.vector_store %arg12[%c0_83, %c1_84, %c8_85], %87 {strides = array<i32>} : memref<2x18x144xf32, #tpu.memory_space<vmem>>, vector<2x16x128xf32>,
    %c0_86 = arith.constant 0 : index
    %c0_87 = arith.constant 0 : index
    %c0_88 = arith.constant 0 : index
    %89 = vector.load %arg12[%c0_86, %c0_87, %c0_88] : memref<2x18x144xf32, #tpu.memory_space<vmem>>, vector<2x16x128xf32>
    %90 = vector.shape_cast %89 : vector<2x16x128xf32> to vector<32x128xf32>
    %91 = arith.truncf %90 : vector<32x128xf32> to vector<32x128xbf16>
    %c0_89 = arith.constant 0 : index
    %c0_90 = arith.constant 0 : index
    %92 = vector.load %arg13[%c0_89, %c0_90] : memref<32x1152xbf16, #tpu.memory_space<vmem>>, vector<32x128xbf16>
    tpu.vector_store %arg13[%c0_89, %c0_90], %91 {strides = array<i32>} : memref<32x1152xbf16, #tpu.memory_space<vmem>>, vector<32x128xbf16>,
    %c0_91 = arith.constant 0 : index
    %c0_92 = arith.constant 0 : index
    %c8_93 = arith.constant 8 : index
    %93 = vector.load %arg12[%c0_91, %c0_92, %c8_93] : memref<2x18x144xf32, #tpu.memory_space<vmem>>, vector<2x16x128xf32>
    %94 = vector.shape_cast %93 : vector<2x16x128xf32> to vector<32x128xf32>
    %95 = arith.truncf %94 : vector<32x128xf32> to vector<32x128xbf16>
    %c0_94 = arith.constant 0 : index
    %c128_95 = arith.constant 128 : index
    %96 = vector.load %arg13[%c0_94, %c128_95] : memref<32x1152xbf16, #tpu.memory_space<vmem>>, vector<32x128xbf16>
    tpu.vector_store %arg13[%c0_94, %c128_95], %95 {strides = array<i32>} : memref<32x1152xbf16, #tpu.memory_space<vmem>>, vector<32x128xbf16>,
    %c0_96 = arith.constant 0 : index
    %c0_97 = arith.constant 0 : index
    %c16_98 = arith.constant 16 : index
    %97 = vector.load %arg12[%c0_96, %c0_97, %c16_98] : memref<2x18x144xf32, #tpu.memory_space<vmem>>, vector<2x16x128xf32>
    %98 = vector.shape_cast %97 : vector<2x16x128xf32> to vector<32x128xf32>
    %99 = arith.truncf %98 : vector<32x128xf32> to vector<32x128xbf16>
    %c0_99 = arith.constant 0 : index
    %c256_100 = arith.constant 256 : index
    %100 = vector.load %arg13[%c0_99, %c256_100] : memref<32x1152xbf16, #tpu.memory_space<vmem>>, vector<32x128xbf16>
    tpu.vector_store %arg13[%c0_99, %c256_100], %99 {strides = array<i32>} : memref<32x1152xbf16, #tpu.memory_space<vmem>>, vector<32x128xbf16>,
    %c0_101 = arith.constant 0 : index
    %c1_102 = arith.constant 1 : index
    %c0_103 = arith.constant 0 : index
    %101 = vector.load %arg12[%c0_101, %c1_102, %c0_103] : memref<2x18x144xf32, #tpu.memory_space<vmem>>, vector<2x16x128xf32>
    %102 = vector.shape_cast %101 : vector<2x16x128xf32> to vector<32x128xf32>
    %103 = arith.truncf %102 : vector<32x128xf32> to vector<32x128xbf16>
    %c0_104 = arith.constant 0 : index
    %c384_105 = arith.constant 384 : index
    %104 = vector.load %arg13[%c0_104, %c384_105] : memref<32x1152xbf16, #tpu.memory_space<vmem>>, vector<32x128xbf16>
    tpu.vector_store %arg13[%c0_104, %c384_105], %103 {strides = array<i32>} : memref<32x1152xbf16, #tpu.memory_space<vmem>>, vector<32x128xbf16>,
    %c0_106 = arith.constant 0 : index
    %c1_107 = arith.constant 1 : index
    %c8_108 = arith.constant 8 : index
    %105 = vector.load %arg12[%c0_106, %c1_107, %c8_108] : memref<2x18x144xf32, #tpu.memory_space<vmem>>, vector<2x16x128xf32>
    %106 = vector.shape_cast %105 : vector<2x16x128xf32> to vector<32x128xf32>
    %107 = arith.truncf %106 : vector<32x128xf32> to vector<32x128xbf16>
    %c0_109 = arith.constant 0 : index
    %c512_110 = arith.constant 512 : index
    %108 = vector.load %arg13[%c0_109, %c512_110] : memref<32x1152xbf16, #tpu.memory_space<vmem>>, vector<32x128xbf16>
    tpu.vector_store %arg13[%c0_109, %c512_110], %107 {strides = array<i32>} : memref<32x1152xbf16, #tpu.memory_space<vmem>>, vector<32x128xbf16>,
    %c0_111 = arith.constant 0 : index
    %c1_112 = arith.constant 1 : index
    %c16_113 = arith.constant 16 : index
    %109 = vector.load %arg12[%c0_111, %c1_112, %c16_113] : memref<2x18x144xf32, #tpu.memory_space<vmem>>, vector<2x16x128xf32>
    %110 = vector.shape_cast %109 : vector<2x16x128xf32> to vector<32x128xf32>
    %111 = arith.truncf %110 : vector<32x128xf32> to vector<32x128xbf16>
    %c0_114 = arith.constant 0 : index
    %c640_115 = arith.constant 640 : index
    %112 = vector.load %arg13[%c0_114, %c640_115] : memref<32x1152xbf16, #tpu.memory_space<vmem>>, vector<32x128xbf16>
    tpu.vector_store %arg13[%c0_114, %c640_115], %111 {strides = array<i32>} : memref<32x1152xbf16, #tpu.memory_space<vmem>>, vector<32x128xbf16>,
    %c0_116 = arith.constant 0 : index
    %c2_117 = arith.constant 2 : index
    %c0_118 = arith.constant 0 : index
    %113 = vector.load %arg12[%c0_116, %c2_117, %c0_118] : memref<2x18x144xf32, #tpu.memory_space<vmem>>, vector<2x16x128xf32>
    %114 = vector.shape_cast %113 : vector<2x16x128xf32> to vector<32x128xf32>
    %115 = arith.truncf %114 : vector<32x128xf32> to vector<32x128xbf16>
    %c0_119 = arith.constant 0 : index
    %c768_120 = arith.constant 768 : index
    %116 = vector.load %arg13[%c0_119, %c768_120] : memref<32x1152xbf16, #tpu.memory_space<vmem>>, vector<32x128xbf16>
    tpu.vector_store %arg13[%c0_119, %c768_120], %115 {strides = array<i32>} : memref<32x1152xbf16, #tpu.memory_space<vmem>>, vector<32x128xbf16>,
    %c0_121 = arith.constant 0 : index
    %c2_122 = arith.constant 2 : index
    %c8_123 = arith.constant 8 : index
    %117 = vector.load %arg12[%c0_121, %c2_122, %c8_123] : memref<2x18x144xf32, #tpu.memory_space<vmem>>, vector<2x16x128xf32>
    %118 = vector.shape_cast %117 : vector<2x16x128xf32> to vector<32x128xf32>
    %119 = arith.truncf %118 : vector<32x128xf32> to vector<32x128xbf16>
    %c0_124 = arith.constant 0 : index
    %c896_125 = arith.constant 896 : index
    %120 = vector.load %arg13[%c0_124, %c896_125] : memref<32x1152xbf16, #tpu.memory_space<vmem>>, vector<32x128xbf16>
    tpu.vector_store %arg13[%c0_124, %c896_125], %119 {strides = array<i32>} : memref<32x1152xbf16, #tpu.memory_space<vmem>>, vector<32x128xbf16>,
    %c0_126 = arith.constant 0 : index
    %c2_127 = arith.constant 2 : index
    %c16_128 = arith.constant 16 : index
    %121 = vector.load %arg12[%c0_126, %c2_127, %c16_128] : memref<2x18x144xf32, #tpu.memory_space<vmem>>, vector<2x16x128xf32>
    %122 = vector.shape_cast %121 : vector<2x16x128xf32> to vector<32x128xf32>
    %123 = arith.truncf %122 : vector<32x128xf32> to vector<32x128xbf16>
    %c0_129 = arith.constant 0 : index
    %c1024_130 = arith.constant 1024 : index
    %124 = vector.load %arg13[%c0_129, %c1024_130] : memref<32x1152xbf16, #tpu.memory_space<vmem>>, vector<32x128xbf16>
    tpu.vector_store %arg13[%c0_129, %c1024_130], %123 {strides = array<i32>} : memref<32x1152xbf16, #tpu.memory_space<vmem>>, vector<32x128xbf16>,
    %c0_131 = arith.constant 0 : index
    %c0_132 = arith.constant 0 : index
    %125 = vector.load %arg13[%c0_131, %c0_132] : memref<32x1152xbf16, #tpu.memory_space<vmem>>, vector<32x1152xbf16>
    %c0_133 = arith.constant 0 : index
    %c0_134 = arith.constant 0 : index
    %126 = vector.load %arg5[%c0_133, %c0_134] : memref<1152x128xbf16, #tpu.memory_space<vmem>>, vector<1152x128xbf16>
    %cst_135 = arith.constant dense<0.000000e+00> : vector<32x128xf32>
    %127 = tpu.matmul %125, %126, %cst_135 {dimension_numbers = #tpu.dot_dimension_numbers<[1], [0], [0], [1], [0, 0, 1, 1], [], []>} : vector<32x1152xbf16>, vector<1152x128xbf16>, vector<32x128xf32> -> vector<32x128xf32>
    %c0_136 = arith.constant 0 : index
    %c0_137 = arith.constant 0 : index
    %128 = vector.load %arg6[%c0_136, %c0_137] : memref<1x8xf32, #tpu.memory_space<vmem>>, vector<1x8xf32>
    %c0_138 = arith.constant 0 : index
    %c0_139 = arith.constant 0 : index
    %129 = vector.load %arg9[%c0_138, %c0_139] : memref<8x128xf32, #tpu.memory_space<vmem>>, vector<8x128xf32>
    %cst_140 = arith.constant dense<0.000000e+00> : vector<1x128xf32>
    %130 = tpu.matmul %128, %129, %cst_140 {dimension_numbers = #tpu.dot_dimension_numbers<[1], [0], [0], [1], [0, 0, 1, 1], [], []>} : vector<1x8xf32>, vector<8x128xf32>, vector<1x128xf32> -> vector<1x128xf32>
    %131 = vector.broadcast %130 : vector<1x128xf32> to vector<32x128xf32>
    %132 = arith.addf %127, %131 : vector<32x128xf32>
    %cst_141 = arith.constant dense<0.000000e+00> : vector<128xf32>
    %133 = vector.multi_reduction <add>, %132, %cst_141 [0] : vector<32x128xf32> to vector<128xf32>
    %134 = vector.shape_cast %133 : vector<128xf32> to vector<1x128xf32>
    %135 = arith.mulf %132, %132 : vector<32x128xf32>
    %cst_142 = arith.constant dense<0.000000e+00> : vector<128xf32>
    %136 = vector.multi_reduction <add>, %135, %cst_142 [0] : vector<32x128xf32> to vector<128xf32>
    %137 = vector.shape_cast %136 : vector<128xf32> to vector<1x128xf32>
    %c0_143 = arith.constant 0 : index
    %c0_144 = arith.constant 0 : index
    %138 = vector.load %arg10[%c0_143, %c0_144] : memref<128x8xf32, #tpu.memory_space<vmem>>, vector<128x8xf32>
    %cst_145 = arith.constant dense<0.000000e+00> : vector<1x8xf32>
    %139 = tpu.matmul %134, %138, %cst_145 {dimension_numbers = #tpu.dot_dimension_numbers<[1], [0], [0], [1], [0, 0, 1, 1], [], []>} : vector<1x128xf32>, vector<128x8xf32>, vector<1x8xf32> -> vector<1x8xf32>
    %c0_146 = arith.constant 0 : index
    %c0_147 = arith.constant 0 : index
    %140 = vector.load %arg10[%c0_146, %c0_147] : memref<128x8xf32, #tpu.memory_space<vmem>>, vector<128x8xf32>
    %cst_148 = arith.constant dense<0.000000e+00> : vector<1x8xf32>
    %141 = tpu.matmul %137, %140, %cst_148 {dimension_numbers = #tpu.dot_dimension_numbers<[1], [0], [0], [1], [0, 0, 1, 1], [], []>} : vector<1x128xf32>, vector<128x8xf32>, vector<1x8xf32> -> vector<1x8xf32>
    %cst_149 = arith.constant 0.001953125 : f32
    %142 = vector.broadcast %cst_149 : f32 to vector<1x8xf32>
    %143 = arith.mulf %139, %142 : vector<1x8xf32>
    %cst_150 = arith.constant 0.001953125 : f32
    %144 = vector.broadcast %cst_150 : f32 to vector<1x8xf32>
    %145 = arith.mulf %141, %144 : vector<1x8xf32>
    %146 = arith.mulf %143, %143 : vector<1x8xf32>
    %147 = arith.subf %145, %146 : vector<1x8xf32>
    %c0_151 = arith.constant 0 : index
    %c0_152 = arith.constant 0 : index
    %148 = vector.load %arg7[%c0_151, %c0_152] : memref<1x8xf32, #tpu.memory_space<vmem>>, vector<1x8xf32>
    %cst_153 = arith.constant 9.99999974E-6 : f32
    %149 = vector.broadcast %cst_153 : f32 to vector<1x8xf32>
    %150 = arith.addf %147, %149 : vector<1x8xf32>
    %151 = math.rsqrt %150 : vector<1x8xf32>
    %152 = arith.mulf %148, %151 : vector<1x8xf32>
    %c0_154 = arith.constant 0 : index
    %c0_155 = arith.constant 0 : index
    %153 = vector.load %arg8[%c0_154, %c0_155] : memref<1x8xf32, #tpu.memory_space<vmem>>, vector<1x8xf32>
    %154 = arith.mulf %143, %152 : vector<1x8xf32>
    %155 = arith.subf %153, %154 : vector<1x8xf32>
    %c0_156 = arith.constant 0 : index
    %c0_157 = arith.constant 0 : index
    %156 = vector.load %arg9[%c0_156, %c0_157] : memref<8x128xf32, #tpu.memory_space<vmem>>, vector<8x128xf32>
    %cst_158 = arith.constant dense<0.000000e+00> : vector<1x128xf32>
    %157 = tpu.matmul %152, %156, %cst_158 {dimension_numbers = #tpu.dot_dimension_numbers<[1], [0], [0], [1], [0, 0, 1, 1], [], []>} : vector<1x8xf32>, vector<8x128xf32>, vector<1x128xf32> -> vector<1x128xf32>
    %c0_159 = arith.constant 0 : index
    %c0_160 = arith.constant 0 : index
    %158 = vector.load %arg9[%c0_159, %c0_160] : memref<8x128xf32, #tpu.memory_space<vmem>>, vector<8x128xf32>
    %cst_161 = arith.constant dense<0.000000e+00> : vector<1x128xf32>
    %159 = tpu.matmul %155, %158, %cst_161 {dimension_numbers = #tpu.dot_dimension_numbers<[1], [0], [0], [1], [0, 0, 1, 1], [], []>} : vector<1x8xf32>, vector<8x128xf32>, vector<1x128xf32> -> vector<1x128xf32>
    %160 = vector.broadcast %157 : vector<1x128xf32> to vector<32x128xf32>
    %161 = arith.mulf %132, %160 : vector<32x128xf32>
    %162 = vector.broadcast %159 : vector<1x128xf32> to vector<32x128xf32>
    %163 = arith.addf %161, %162 : vector<32x128xf32>
    %c0_162 = arith.constant 0 : index
    %c0_163 = arith.constant 0 : index
    %c0_164 = arith.constant 0 : index
    %164 = vector.load %arg0[%c0_162, %c0_163, %c0_164] : memref<2x16x128xf32, #tpu.memory_space<vmem>>, vector<2x16x128xf32>
    %165 = vector.shape_cast %164 : vector<2x16x128xf32> to vector<32x128xf32>
    %166 = arith.addf %163, %165 : vector<32x128xf32>
    %cst_165 = arith.constant 0.000000e+00 : f32
    %167 = vector.broadcast %cst_165 : f32 to vector<32x128xf32>
    %168 = arith.maximumf %166, %167 : vector<32x128xf32>
    %c0_166 = arith.constant 0 : index
    %c0_167 = arith.constant 0 : index
    %169 = vector.load %arg11[%c0_166, %c0_167] : memref<32x128xf32, #tpu.memory_space<vmem>>, vector<32x128xf32>
    tpu.vector_store %arg11[%c0_166, %c0_167], %168 {strides = array<i32>} : memref<32x128xf32, #tpu.memory_space<vmem>>, vector<32x128xf32>,
    return
  }
}

</mosaic_0001>

<bundles_post_ra>
// kernel: basic_block_forward.1
= control target key start
LH: loop header
LB: loop body
LE: loop exit
PB: predicated region body
PF: predicated region fallthrough
CT: control target
= control target key end

     0   :  { %v39_v0 = vlaneseq  ;;  %vm54_vm0 = vcmask 64513   ;;  %vm80_vm1 = vcmask 1040384   ;;  %v5191_v4 = vmov 0.0   ;;  %s5192_s25 = smov 8   ;;  %s5194_s13 = smov 120   ;;  %s6402_s0 = inlined_call_operand.vmem [shape: f32[2,16,128], index: 0, kind: input, shape index: {}]   ;;  %s6403_s9 = inlined_call_operand.vmem [shape: f32[8,128], index: 9, kind: input, shape index: {}]   ;;  %s6404_s2 = inlined_call_operand.vmem [shape: f32[1,8], index: 2, kind: input, shape index: {}]   ;;  %s6405_s1 = inlined_call_operand.vmem [shape: bf16[1152,128], index: 1, kind: input, shape index: {}]   ;;  %s6406_s10 = inlined_call_operand.vmem [shape: f32[128,8], index: 10, kind: input, shape index: {}]   ;;  %s6407_s3 = inlined_call_operand.vmem [shape: f32[1,8], index: 3, kind: input, shape index: {}]   ;;  %s6408_s4 = inlined_call_operand.vmem [shape: f32[1,8], index: 4, kind: input, shape index: {}]   ;;  %s6409_s6 = inlined_call_operand.vmem [shape: f32[1,8], index: 6, kind: input, shape index: {}]   ;;  %s6410_s5 = inlined_call_operand.vmem [shape: bf16[1152,128], index: 5, kind: input, shape index: {}]   ;;  %s6411_s7 = inlined_call_operand.vmem [shape: f32[1,8], index: 7, kind: input, shape index: {}]   ;;  %s6412_s8 = inlined_call_operand.vmem [shape: f32[1,8], index: 8, kind: input, shape index: {}]   ;;  %s6413_s11 = inlined_call_operand.vmem [shape: f32[32,128], index: 11, kind: output, shape index: {}]  }
   0x1   :  { %v72_v1 = vld [vmem:[%s6402_s0] sm:$0xff]  ;;  %v74_v2 = vld [vmem:[%s6402_s0 + $0x10] sm:$0xff]  ;;  %v73_v3 = vld [vmem:[%s6402_s0 + $0x8] sm:$0xff]  ;;  %55 = vst.msk [vmem:[#allocation2] sm:$0xfe] %vm54_vm0, %v5191_v4  ;;  %vm63_vm2 = vcmask 130113   ;;  %4776 = vmatprep.subr.mxu1 %v5191_v4 }
   0x2   :  { %60 = vst.msk [vmem:[#allocation2 + $0x30] sm:$0xfe] %vm54_vm0, %v5191_v4  ;;  %vm56_vm3 = vcmask 64512   ;;  %v81_v5 = vrot.slane %v72_v1, 7  ;;  %v84_v6 = vrot.slane %v74_v2, 7  ;;  %v82_v7 = vrot.slane %v73_v3, 7 }
   0x3   :  { %v75_v8 = vld [vmem:[%s6402_s0 + $0x18] sm:$0xff]  ;;  %vm41_vm4 = vcmp.lt.s32.totalorder %v39_v0, 144  ;;  %64 = vst.msk [vmem:[#allocation2 + $0x8] sm:$0xfe] %vm63_vm2, %v5191_v4  ;;  %69 = vst.msk [vmem:[#allocation2 + $0x38] sm:$0xfe] %vm63_vm2, %v5191_v4 }
   0x4   :  { %57 = vst.msk [vmem:[#allocation2 + $0x10] sm:$0xff] %vm56_vm3, %v5191_v4  ;;  %61 = vst.msk [vmem:[#allocation2 + $0x40] sm:$0xff] %vm56_vm3, %v5191_v4  ;;  %v85_v9 = vrot.slane %v75_v8, 7  ;;  %vm65_vm5 = vcmask 130112   ;;  %87 = vrot.lane.b32.xlu0 %v81_v5, %s5192_s25  ;;  %93 = vrot.lane.b32.xlu1 %v84_v6, %s5192_s25  ;;  %vm58_vm6 = vcmask 57344   ;;  %vm67_vm7 = vcmask 122944  }
   0x5   :  { %43 = vst.msk [vmem:[#allocation2] ss:$8 sm:$0x3] %vm41_vm4, %v5191_v4  ;;  %46 = vst.msk [vmem:[#allocation2 + $0x30] ss:$8 sm:$0x3] %vm41_vm4, %v5191_v4  ;;  %v83_v10 = vsel %vm80_vm1, %v81_v5, %v82_v7 }
   0x6   :  { %49 = vst.msk [vmem:[#allocation2 + $0x21] ss:$8 sm:$0x3] %vm41_vm4, %v5191_v4  ;;  %52 = vst.msk [vmem:[#allocation2 + $0x51] ss:$8 sm:$0x3] %vm41_vm4, %v5191_v4  ;;  %v86_v11 = vsel %vm80_vm1, %v84_v6, %v85_v9 }
   0x7   :  { %66 = vst.msk [vmem:[#allocation2 + $0x18] sm:$0xff] %vm65_vm5, %v5191_v4  ;;  %70 = vst.msk [vmem:[#allocation2 + $0x48] sm:$0xff] %vm65_vm5, %v5191_v4  ;;  %v893_v12 = vld [vmem:[%s6403_s9] sm:$0xff]  ;;  %vm5193_vm8 = vmmov 0   ;;  %v4991_v14 = vld [vmem:[%s6405_s1 + $0x78] sm:$0xff]   ;;  %vm105_vm9 = vcmask 1047617  }
   0x8   :  { %59 = vst.msk [vmem:[#allocation2 + $0x20] sm:$0x1] %vm58_vm6, %v5191_v4  ;;  %62 = vst.msk [vmem:[#allocation2 + $0x50] sm:$0x1] %vm58_vm6, %v5191_v4  ;;  %89 = vrot.lane.b32.xlu0 %v83_v10, %s5192_s25  ;;  %95 = vrot.lane.b32.xlu1 %v86_v11, %s5192_s25  ;;  %v892_v13 = vld [vmem:[%s6404_s2] sm:$0x1] }
   0x9   :  { %68 = vst.msk [vmem:[#allocation2 + $0x28] sm:$0x1] %vm67_vm7, %v5191_v4  ;;  %71 = vst.msk [vmem:[#allocation2 + $0x58] sm:$0x1] %vm67_vm7, %v5191_v4  ;;  %4778 = vmatprep.mubr.msk.f32.mxu1 %vm5193_vm8, %v5191_v4  ;;  %4777 = vmatpush3.msra.mxu1 %v893_v12  ;;  %v4992_v15 = vld [vmem:[%s6405_s1 + $0x38] sm:$0xff]   ;;  %v4993_v16 = vld [vmem:[%s6405_s1 + $0x70] sm:$0xff]  }
   0xa   :  { %4779 = vmatmul.mubr.msk.f32.vlgmr.msra.gmra.mxu1 %vm56_vm3, %v892_v13  ;;  %4454 = vmatprep.subr.bf16.mxu1 %v4991_v14  ;;  %v4994_v17 = vld [vmem:[%s6405_s1 + $0x30] sm:$0xff]   ;;  %v4995_v18 = vld [vmem:[%s6405_s1 + $0x68] sm:$0xff]   ;;  %v4996_v19 = vld [vmem:[%s6405_s1 + $0xf8] sm:$0xff]   ;;  %vm108_vm10 = vcmask 1047616   ;;  %vm111_vm11 = vcmask 1040448   ;;  %vm501_vm12 = vcmask 1045504  }
   0xb   :  { %4455 = vmatpush3.bf16.msra.mxu1 %v4992_v15  ;;  %v4997_v20 = vld [vmem:[%s6405_s1 + $0x28] sm:$0xff]   ;;  %4482 = vmatprep.subr.bf16.mxu0 %v4996_v19  ;;  %v4998_v21 = vld [vmem:[%s6405_s1 + $0xb8] sm:$0xff]   ;;  %v4999_v22 = vld [vmem:[%s6405_s1 + $0x60] sm:$0xff]   ;;  %vm262_vm13 = vcmask 1046528   ;;  %s5195_s19 = smov 112   ;;  %vm184_vm14 = vcmask 982016  }
   0xc   :  { %91 = vrot.lane.b32.xlu0 %v82_v7, %s5192_s25  ;;  %97 = vrot.lane.b32.xlu1 %v85_v9, %s5192_s25  ;;  %v5000_v23 = vld [vmem:[%s6405_s1 + $0xf0] sm:$0xff]   ;;  %v5001_v24 = vld [vmem:[%s6405_s1 + $0x20] sm:$0xff]   ;;  %vm237_vm15 = vcmask 916480  }
   0xd   :  { %4456 = vmatprep.subr.bf16.mxu1 %v4993_v16  ;;  %4483 = vmatpush3.bf16.msra.mxu0 %v4998_v21  ;;  %v5002_v25 = vld [vmem:[%s6405_s1 + $0xb0] sm:$0xff]   ;;  %v5003_v28 = vld [vmem:[%s6405_s1 + $0x58] sm:$0xff]   ;;  %v5004_v29 = vld [vmem:[%s6405_s1 + $0xe8] sm:$0xff]  }
   0xe   :  { %4484 = vmatprep.subr.bf16.mxu0 %v5000_v23  ;;  %v5005_v30 = vld [vmem:[%s6405_s1 + $0x18] sm:$0xff]   ;;  %v5006_v31 = vld [vmem:[%s6405_s1 + $0xa8] sm:$0xff]   ;;  %v5007_v34 = vld [vmem:[%s6405_s1 + $0x50] sm:$0xff]  }
   0xf   :  { %4457 = vmatpush3.bf16.msra.mxu1 %v4994_v17  ;;  %v5008_v35 = vld [vmem:[%s6405_s1 + $0xe0] sm:$0xff]   ;;  %v5009_v36 = vld [vmem:[%s6405_s1 + $0x10] sm:$0xff]   ;;  %v5011_v62 = vld [vmem:[%s6405_s1 + $0x48] sm:$0xff]  }
  0x10   :  { %4458 = vmatprep.subr.bf16.mxu1 %v4995_v18  ;;  %v5010_v37 = vld [vmem:[%s6405_s1 + $0xa0] sm:$0xff]   ;;  %v5012_v11 = vld [vmem:[%s6405_s1 + $0xd8] sm:$0xff]  }
  0x11   :  { %4485 = vmatpush3.bf16.msra.mxu0 %v5002_v25 }
  0x12   :  { %4486 = vmatprep.subr.bf16.mxu0 %v5004_v29 }
  0x13   :  { %4459 = vmatpush3.bf16.msra.mxu1 %v4997_v20 }
  0x14   :  { %4460 = vmatprep.subr.bf16.mxu1 %v4999_v22 }
  0x15   :  { %4487 = vmatpush3.bf16.msra.mxu0 %v5006_v31 }
  0x16   :  { %4488 = vmatprep.subr.bf16.mxu0 %v5008_v35 }
  0x17   :  { %4461 = vmatpush3.bf16.msra.mxu1 %v5001_v24 }
  0x18   :  { %4462 = vmatprep.subr.bf16.mxu1 %v5003_v28  ;;  %v5013_v28 = vld [vmem:[%s6405_s1 + $0x8] sm:$0xff]  }
  0x19   :  { %4489 = vmatpush3.bf16.msra.mxu0 %v5010_v37 }
  0x1a   :  { %4490 = vmatprep.subr.bf16.mxu0 %v5012_v11 }
  0x1b   :  { %4463 = vmatpush3.bf16.msra.mxu1 %v5005_v30 }
  0x1c   :  { %4464 = vmatprep.subr.bf16.mxu1 %v5007_v34 }
  0x1f   :  { %4465 = vmatpush3.bf16.msra.mxu1 %v5009_v36 }
  0x20   :  { %4466 = vmatprep.subr.bf16.mxu1 %v5011_v62 }
  0x23   :  { %4467 = vmatpush3.bf16.msra.mxu1 %v5013_v28 }
  0x76   :  { %v88_v26 = vpop.permute.xlu0 %87  ;;  %v94_v27 = vpop.permute.xlu1 %93 }
  0x77   :  { %106 = vst.msk [vmem:[#allocation2] sm:$0xfe] %vm105_vm9, %v88_v26  ;;  %114 = vst.msk [vmem:[#allocation2 + $0x30] sm:$0xfe] %vm105_vm9, %v94_v27 }
  0x78   :  { %107 = vst.msk [vmem:[#allocation2 + $0x8] sm:$0xfe] %vm54_vm0, %v88_v26  ;;  %115 = vst.msk [vmem:[#allocation2 + $0x38] sm:$0xfe] %vm54_vm0, %v94_v27 }
  0x7a   :  { %v90_v32 = vpop.permute.xlu0 %89  ;;  %v96_v33 = vpop.permute.xlu1 %95 }
  0x7b   :  { %109 = vst.msk [vmem:[#allocation2 + $0x10] sm:$0xff] %vm108_vm10, %v90_v32  ;;  %116 = vst.msk [vmem:[#allocation2 + $0x40] sm:$0xff] %vm108_vm10, %v96_v33 }
  0x7c   :  { %110 = vst.msk [vmem:[#allocation2 + $0x18] sm:$0xff] %vm56_vm3, %v90_v32  ;;  %117 = vst.msk [vmem:[#allocation2 + $0x48] sm:$0xff] %vm56_vm3, %v96_v33 }
  0x7e   :  { %v120_v38 = vld [vmem:[#allocation2] sm:$0xff]  ;;  %v92_v39 = vpop.permute.xlu0 %91  ;;  %v98_v40 = vpop.permute.xlu1 %97  ;;  %v122_v42 = vld [vmem:[#allocation2 + $0x30] sm:$0xff] }
  0x7f   :  { %v4380_v41 = vpack.c.bf16 %v120_v38, %v120_v38  ;;  %v253_v43 = vld [vmem:[#allocation2 + $0x30] sm:$0xfe]  ;;  %112 = vst.msk [vmem:[#allocation2 + $0x20] sm:$0x1] %vm111_vm11, %v92_v39  ;;  %v145_v44 = vld [vmem:[#allocation2 + $0x8] sm:$0xff]  ;;  %v4382_v46 = vpack.c.bf16 %v122_v42, %v122_v42  ;;  %v149_v49 = vld [vmem:[#allocation2 + $0x38] sm:$0xff] }
  0x80   :  { %113 = vst.msk [vmem:[#allocation2 + $0x28] sm:$0x1] %vm58_vm6, %v92_v39  ;;  %119 = vst.msk [vmem:[#allocation2 + $0x58] sm:$0x1] %vm58_vm6, %v98_v40  ;;  %v489_v45 = vld [vmem:[#allocation2] sm:$0xfc]  ;;  %v5381_v48 = vpack.c.bf16 %v145_v44, %v120_v38  ;;  %v5385_v55 = vpack.c.bf16 %v149_v49, %v122_v42 }
  0x81   :  { %118 = vst.msk [vmem:[#allocation2 + $0x50] sm:$0x1] %vm111_vm11, %v98_v40  ;;  %v492_v47 = vld [vmem:[#allocation2 + $0x30] sm:$0xfc]  ;;  %140 = vst [vmem:[#allocation3] sm:$0xf] %v4380_v41 }
  0x82   :  { %v297_v50 = vld [vmem:[#allocation2] sm:$0xfe]  ;;  %142 = vst [vmem:[#allocation3 + $0x48] sm:$0xf] %v4382_v46  ;;  %v268_v51 = vrot.slane %v253_v43, 1  ;;  %v507_v52 = vrot.slane %v492_v47, 2  ;;  %172 = vrot.lane.b32.xlu0 %v5381_v48, %s5194_s13 }
  0x83   :  { %v121_v53 = vld [vmem:[#allocation2 + $0x10] sm:$0xff]  ;;  %v123_v54 = vld [vmem:[#allocation2 + $0x40] sm:$0xff]  ;;  %v5387_v56 = vld [vmem:[#allocation2 + $0x18] sm:$0xff]  ;;  %v502_v57 = vrot.slane %v489_v45, 2  ;;  %v321_v8 = vrot.slane %v297_v50, 1 }
  0x84   :  { %v4381_v58 = vpack.c.bf16 %v121_v53, %v121_v53  ;;  %v5389_v59 = vrot.slane %v121_v53, 2  ;;  %v4383_v60 = vpack.c.bf16 %v123_v54, %v123_v54  ;;  %v5391_v61 = vld [vmem:[#allocation2 + $0x48] sm:$0xff]  ;;  %v5396_v63 = vrot.slane %v121_v53, 1  ;;  %v393_v10 = vld [vmem:[#allocation2] sm:$0xfe]  ;;  %v5014_v39 = vld [vmem:[%s6405_s1 + $0x98] sm:$0xff]  }
  0x85   :  { %v5398_v1 = vrot.slane %v123_v54, 1  ;;  %v5400_v2 = vrot.slane %v123_v54, 2  ;;  %v5403_v3 = vpack.c.bf16 %v5387_v56, %v121_v53  ;;  %v298_v5 = vld [vmem:[#allocation2 + $0x8] sm:$0xfe]  ;;  %v5408_v7 = vpack.c.bf16 %v5391_v61, %v123_v54  ;;  %v303_v46 = vld [vmem:[#allocation2 + $0x30] sm:$0xfe]  ;;  %4491 = vmatpush3.bf16.msra.mxu0 %v5014_v39 }
  0x86   :  { %141 = vst [vmem:[#allocation3 + $0x24] sm:$0xf] %v4381_v58  ;;  %v504_v6 = vsel %vm501_vm12, %v502_v57, %v5389_v59  ;;  %143 = vst [vmem:[#allocation3 + $0x6c] sm:$0xf] %v4383_v60  ;;  %v5411_v9 = vrot.slane %v5387_v56, 1  ;;  %176 = vrot.lane.b32.xlu0 %v5385_v55, %s5194_s13  ;;  %v324_v21 = vrot.slane %v298_v5, 1  ;;  %v323_v24 = vsel %vm262_vm13, %v321_v8, %v5396_v63 }
  0x87   :  { %v4404_v12 = vpack.c.bf16 %v504_v6, %v504_v6  ;;  %v270_v13 = vsel %vm262_vm13, %v268_v51, %v5398_v1  ;;  %v509_v14 = vsel %vm501_vm12, %v507_v52, %v5400_v2  ;;  %v491_v15 = vld [vmem:[#allocation2 + $0x20] sm:$0x3]  ;;  %174 = vrot.lane.b32.xlu1 %v5403_v3, %s5194_s13  ;;  %v394_v17 = vld [vmem:[#allocation2 + $0x8] sm:$0xfe]  ;;  %v302_v27 = vld [vmem:[#allocation2 + $0x28] sm:$0x1] }
  0x88   :  { %v255_v16 = vld [vmem:[#allocation2 + $0x50] sm:$0x1]  ;;  %v4394_v18 = vpack.c.bf16 %v270_v13, %v270_v13  ;;  %v4406_v19 = vpack.c.bf16 %v509_v14, %v509_v14  ;;  %v505_v20 = vrot.slane %v491_v15, 2  ;;  %v301_v23 = vld [vmem:[#allocation2 + $0x20] sm:$0x1]  ;;  %v326_v30 = vsel %vm262_vm13, %v324_v21, %v5411_v9 }
  0x89   :  { %v494_v22 = vld [vmem:[#allocation2 + $0x50] sm:$0x3]  ;;  %532 = vst [vmem:[#allocation3 + $0x18] sm:$0xf] %v4404_v12  ;;  %v271_v25 = vrot.slane %v255_v16, 1  ;;  %v327_v31 = vrot.slane %v301_v23, 1  ;;  %v4396_v43 = vpack.c.bf16 %v326_v30, %v323_v24 }
  0x8a   :  { %v510_v26 = vrot.slane %v494_v22, 2  ;;  %295 = vst [vmem:[#allocation3 + $0x54] sm:$0xf] %v4394_v18  ;;  %534 = vst [vmem:[#allocation3 + $0x60] sm:$0xf] %v4406_v19  ;;  %v506_v29 = vsel %vm501_vm12, %v5389_v59, %v505_v20  ;;  %v329_v32 = vrot.slane %v302_v27, 1  ;;  %225 = vrot.lane.b32.xlu0 %v5381_v48, %s5195_s19 }
  0x8b   :  { %v397_v33 = vld [vmem:[#allocation2 + $0x20] sm:$0x1]  ;;  %v4405_v34 = vpack.c.bf16 %v506_v29, %v506_v29  ;;  %178 = vrot.lane.b32.xlu1 %v5408_v7, %s5194_s13  ;;  %v272_v35 = vsel %vm262_vm13, %v5398_v1, %v271_v25  ;;  %v417_v37 = vrot.slane %v393_v10, 1  ;;  %v398_v38 = vld [vmem:[#allocation2 + $0x28] sm:$0x1]  ;;  %v420_v42 = vrot.slane %v394_v17, 1 }
  0x8c   :  { %v511_v36 = vsel %vm501_vm12, %v5400_v2, %v510_v26  ;;  %v4395_v40 = vpack.c.bf16 %v272_v35, %v272_v35  ;;  %v423_v45 = vrot.slane %v397_v33, 1  ;;  %v304_v47 = vld [vmem:[#allocation2 + $0x38] sm:$0xfe]  ;;  %v5015_v48 = vld [vmem:[%s6405_s1 + $0x40] sm:$0xff]   ;;  %v328_v50 = vsel %vm262_vm13, %v5396_v63, %v327_v31  ;;  %v5016_v53 = vld [vmem:[%s6405_s1 + $0xd0] sm:$0xff]  }
  0x8d   :  { %v4407_v41 = vpack.c.bf16 %v511_v36, %v511_v36  ;;  %533 = vst [vmem:[#allocation3 + $0x3c] sm:$0xf] %v4405_v34  ;;  %v419_v44 = vsel %vm262_vm13, %v417_v37, %v5396_v63  ;;  %v422_v49 = vsel %vm262_vm13, %v420_v42, %v5411_v9  ;;  %v330_v51 = vsel %vm262_vm13, %v5411_v9, %v329_v32  ;;  %v399_v54 = vld [vmem:[#allocation2 + $0x30] sm:$0xfe]  ;;  %v5017_v57 = vld [vmem:[%s6405_s1] sm:$0xff]   ;;  %v5021_v16 = vld [vmem:[%s6405_s1 + $0xc8] sm:$0xff]  }
  0x8e   :  { %296 = vst [vmem:[#allocation3 + $0x78] sm:$0xf] %v4395_v40  ;;  %v425_v52 = vrot.slane %v398_v38, 1  ;;  %369 = vrot.lane.b32.xlu0 %v4396_v43, %s5194_s13  ;;  %v331_v58 = vrot.slane %v303_v46, 1  ;;  %v334_v60 = vrot.slane %v304_v47, 1  ;;  %v5465_v62 = vrot.slane %v5391_v61, 1  ;;  %4468 = vmatprep.subr.bf16.mxu1 %v5015_v48 }
  0x8f   :  { %535 = vst [vmem:[#allocation3 + $0x84] sm:$0xf] %v4407_v41  ;;  %227 = vrot.lane.b32.xlu1 %v5403_v3, %s5195_s19  ;;  %v400_v5 = vld [vmem:[#allocation2 + $0x38] sm:$0xfe]  ;;  %4492 = vmatprep.subr.bf16.mxu0 %v5016_v53  ;;  %v5018_v6 = vld [vmem:[%s6405_s1 + $0x90] sm:$0xff]   ;;  %v4400_v8 = vpack.c.bf16 %v422_v49, %v419_v44  ;;  %v4397_v10 = vpack.c.bf16 %v330_v51, %v328_v50  ;;  %v427_v14 = vrot.slane %v399_v54, 1 }
  0x90   :  { %v307_v3 = vld [vmem:[#allocation2 + $0x50] sm:$0x1]  ;;  %v308_v11 = vld [vmem:[#allocation2 + $0x58] sm:$0x1]  ;;  %4469 = vmatpush3.bf16.msra.mxu1 %v5017_v57  ;;  %v424_v12 = vsel %vm262_vm13, %v5396_v63, %v423_v45  ;;  %v426_v13 = vsel %vm262_vm13, %v5411_v9, %v425_v52  ;;  %4493 = vmatpush3.bf16.msra.mxu0 %v5018_v6  ;;  %v430_v15 = vrot.slane %v400_v5, 1  ;;  %v333_v17 = vsel %vm262_vm13, %v331_v58, %v5398_v1  ;;  %v5024_v22 = vld [vmem:[%s6405_s1 + $0x88] sm:$0xff]  }
  0x91   :  { %v336_v18 = vsel %vm262_vm13, %v334_v60, %v5465_v62  ;;  %v337_v19 = vrot.slane %v307_v3, 1  ;;  %v339_v20 = vrot.slane %v308_v11, 1  ;;  %v5022_v9 = vld [vmem:[%s6405_s1 + $0x178] sm:$0xff]   ;;  %v4401_v21 = vpack.c.bf16 %v426_v13, %v424_v12  ;;  %4494 = vmatprep.subr.bf16.mxu0 %v5021_v16  ;;  %v252_v23 = vld [vmem:[#allocation2 + $0x20] sm:$0x1] }
  0x92   :  { %465 = vrot.lane.b32.xlu0 %v4400_v8, %s5195_s19  ;;  %v403_v24 = vld [vmem:[#allocation2 + $0x50] sm:$0x1]  ;;  %4510 = vmatprep.subr.bf16.mxu1 %v5022_v9  ;;  %v5028_v25 = vld [vmem:[%s6405_s1 + $0xc0] sm:$0xff]   ;;  %v4398_v27 = vpack.c.bf16 %v336_v18, %v333_v17  ;;  %v404_v29 = vld [vmem:[#allocation2 + $0x58] sm:$0x1]  ;;  %v429_v30 = vsel %vm262_vm13, %v427_v14, %v5398_v1  ;;  %v432_v31 = vsel %vm262_vm13, %v430_v15, %v5465_v62  ;;  %v266_v36 = vrot.slane %v252_v23, 1 }
  0x93   :  { %371 = vrot.lane.b32.xlu1 %v4397_v10, %s5194_s13  ;;  %v250_v26 = vld [vmem:[#allocation2] sm:$0xfe]  ;;  %v338_v32 = vsel %vm262_vm13, %v5398_v1, %v337_v19  ;;  %v340_v33 = vsel %vm262_vm13, %v5465_v62, %v339_v20  ;;  %v537_v34 = vld [vmem:[#allocation2 + $0x8] sm:$0xfc]  ;;  %v542_v35 = vld [vmem:[#allocation2 + $0x30] sm:$0xfc]  ;;  %v4402_v44 = vpack.c.bf16 %v432_v31, %v429_v30 }
  0x94   :  { %v536_v28 = vld [vmem:[#allocation2] sm:$0xfc]  ;;  %4495 = vmatpush3.bf16.msra.mxu0 %v5024_v22  ;;  %v5507_v37 = vrot.slane %v5387_v56, 2  ;;  %v433_v38 = vrot.slane %v403_v24, 1  ;;  %v543_v39 = vld [vmem:[#allocation2 + $0x38] sm:$0xfc]  ;;  %v4399_v45 = vpack.c.bf16 %v340_v33, %v338_v32  ;;  %v267_v54 = vsel %vm262_vm13, %v5396_v63, %v266_v36 }
  0x95   :  { %4496 = vmatprep.subr.bf16.mxu0 %v5028_v25  ;;  %v5035_v40 = vld [vmem:[%s6405_s1 + $0x1f8] sm:$0xff]   ;;  %v560_v41 = vrot.slane %v536_v28, 2  ;;  %v435_v42 = vrot.slane %v404_v29, 1  ;;  %v263_v43 = vrot.slane %v250_v26, 1  ;;  %v563_v46 = vrot.slane %v537_v34, 2 }
  0x96   :  { %229 = vrot.lane.b32.xlu0 %v5385_v55, %s5195_s19  ;;  %v5030_v55 = vld [vmem:[%s6405_s1 + $0x80] sm:$0xff]   ;;  %v541_v47 = vld [vmem:[#allocation2 + $0x28] sm:$0x3]  ;;  %v570_v49 = vrot.slane %v542_v35, 2  ;;  %v573_v50 = vrot.slane %v543_v39, 2  ;;  %v5518_v51 = vrot.slane %v5391_v61, 2 }
  0x97   :  { %467 = vrot.lane.b32.xlu1 %v4401_v21, %s5195_s19  ;;  %v540_v56 = vld [vmem:[#allocation2 + $0x20] sm:$0x3]  ;;  %v562_v48 = vsel %vm501_vm12, %v560_v41, %v5389_v59  ;;  %v565_v52 = vsel %vm501_vm12, %v563_v46, %v5507_v37  ;;  %v265_v53 = vsel %vm262_vm13, %v263_v43, %v5396_v63  ;;  %v436_v57 = vsel %vm262_vm13, %v5465_v62, %v435_v42  ;;  %v546_v5 = vld [vmem:[#allocation2 + $0x50] sm:$0x3]  ;;  %v547_v6 = vld [vmem:[#allocation2 + $0x58] sm:$0x3] }
  0x98   :  { %4497 = vmatpush3.bf16.msra.mxu0 %v5030_v55  ;;  %v566_v58 = vrot.slane %v540_v56, 2  ;;  %v568_v61 = vrot.slane %v541_v47, 2  ;;  %v4392_v60 = vpack.c.bf16 %v265_v53, %v265_v53  ;;  %v632_v8 = vld [vmem:[#allocation2] sm:$0xfc]  ;;  %v4408_v10 = vpack.c.bf16 %v565_v52, %v562_v48  ;;  %v633_v11 = vld [vmem:[#allocation2 + $0x8] sm:$0xfc] }
  0x99   :  { %4538 = vmatprep.subr.bf16.mxu0 %v5035_v40  ;;  %v572_v63 = vsel %vm501_vm12, %v570_v49, %v5400_v2  ;;  %v575_v62 = vsel %vm501_vm12, %v573_v50, %v5518_v51  ;;  %v638_v12 = vld [vmem:[#allocation2 + $0x30] sm:$0xfc]  ;;  %v576_v15 = vrot.slane %v546_v5, 2  ;;  %v578_v16 = vrot.slane %v547_v6, 2  ;;  %v639_v17 = vld [vmem:[#allocation2 + $0x38] sm:$0xfc] }
  0x9a   :  { %373 = vrot.lane.b32.xlu0 %v4398_v27, %s5194_s13  ;;  %293 = vst [vmem:[#allocation3 + $0xc] sm:$0xf] %v4392_v60  ;;  %v567_v13 = vsel %vm501_vm12, %v5389_v59, %v566_v58  ;;  %v569_v14 = vsel %vm501_vm12, %v5507_v37, %v568_v61  ;;  %v636_v18 = vld [vmem:[#allocation2 + $0x20] sm:$0x3]  ;;  %v656_v19 = vrot.slane %v632_v8, 2  ;;  %v4410_v9 = vpack.c.bf16 %v575_v62, %v572_v63  ;;  %v5025_v8 = vld [vmem:[%s6405_s1 + $0x138] sm:$0xff]  }
  0x9b   :  { %231 = vrot.lane.b32.xlu1 %v5408_v7, %s5195_s19  ;;  %v434_v7 = vsel %vm262_vm13, %v5398_v1, %v433_v38  ;;  %v4393_v1 = vpack.c.bf16 %v267_v54, %v267_v54  ;;  %v637_v20 = vld [vmem:[#allocation2 + $0x28] sm:$0x3]  ;;  %v659_v21 = vrot.slane %v633_v11, 2  ;;  %v666_v22 = vrot.slane %v638_v12, 2  ;;  %v642_v31 = vld [vmem:[#allocation2 + $0x50] sm:$0x3] }
  0x9c   :  { %v4403_v3 = vpack.c.bf16 %v436_v57, %v434_v7  ;;  %v4409_v23 = vpack.c.bf16 %v569_v14, %v567_v13  ;;  %v658_v24 = vsel %vm501_vm12, %v656_v19, %v5389_v59  ;;  %v669_v25 = vrot.slane %v639_v17, 2  ;;  %v643_v32 = vld [vmem:[#allocation2 + $0x58] sm:$0x3]  ;;  %v5023_v62 = vld [vmem:[#allocation3] ss:$36 sps:$4 sm:$0xff]   ;;  %v5029_v13 = vld [vmem:[%s6405_s1 + $0x170] sm:$0xff]  }
  0x9d   :  { %294 = vst [vmem:[#allocation3 + $0x30] sm:$0xf] %v4393_v1  ;;  %v662_v26 = vrot.slane %v636_v18, 2  ;;  %v661_v27 = vsel %vm501_vm12, %v659_v21, %v5507_v37  ;;  %v577_v28 = vsel %vm501_vm12, %v5400_v2, %v576_v15  ;;  %v579_v29 = vsel %vm501_vm12, %v5518_v51, %v578_v16  ;;  %v5031_v19 = vld [vmem:[%s6405_s1 + $0x130] sm:$0xff]   ;;  %v5034_v21 = vld [vmem:[%s6405_s1 + $0x168] sm:$0xff]  }
  0x9e   :  { %469 = vrot.lane.b32.xlu0 %v4402_v44, %s5195_s19  ;;  %v664_v30 = vrot.slane %v637_v20, 2  ;;  %v4412_v33 = vpack.c.bf16 %v661_v27, %v658_v24  ;;  %v4411_v34 = vpack.c.bf16 %v579_v29, %v577_v28  ;;  %v668_v35 = vsel %vm501_vm12, %v666_v22, %v5400_v2  ;;  %v5038_v27 = vld [vmem:[%s6405_s1 + $0x1b8] sm:$0xff]  }
  0x9f   :  { %375 = vrot.lane.b32.xlu1 %v4399_v45, %s5194_s13  ;;  %v671_v55 = vsel %vm501_vm12, %v669_v25, %v5518_v51  ;;  %v663_v36 = vsel %vm501_vm12, %v5389_v59, %v662_v26  ;;  %v672_v39 = vrot.slane %v642_v31, 2  ;;  %v674_v40 = vrot.slane %v643_v32, 2  ;;  %v5037_v26 = vld [vmem:[%s6405_s1 + $0x128] sm:$0xff]  }
  0xa0   :  { %v665_v38 = vsel %vm501_vm12, %v5507_v37, %v664_v30  ;;  %v4414_v41 = vpack.c.bf16 %v671_v55, %v668_v35  ;;  %v5039_v35 = vld [vmem:[%s6405_s1 + $0x160] sm:$0xff]   ;;  %v5040_v55 = vld [vmem:[%s6405_s1 + $0x1f0] sm:$0xff]  }
  0xa1   :  { %v4413_v42 = vpack.c.bf16 %v665_v38, %v663_v36  ;;  %v673_v43 = vsel %vm501_vm12, %v5400_v2, %v672_v39  ;;  %v675_v44 = vsel %vm501_vm12, %v5518_v51, %v674_v40 }
  0xa2   :  { %608 = vrot.lane.b32.xlu0 %v4408_v10, %s5194_s13  ;;  %v4415_v59 = vpack.c.bf16 %v675_v44, %v673_v43 }
  0xa3   :  { %471 = vrot.lane.b32.xlu1 %v4403_v3, %s5195_s19 }
  0xa4   :  { %v5032_v30 = vld [vmem:[#allocation3 + $0xc] ss:$36 sps:$4 sm:$0xff]  }
  0xa5   :  { %1576 = vmatprep.mubr.bf16.mxu0 %v5032_v30 }
  0xa6   :  { %612 = vrot.lane.b32.xlu0 %v4410_v9, %s5194_s13 }
  0xa7   :  { %610 = vrot.lane.b32.xlu1 %v4409_v23, %s5194_s13 }
  0xaa   :  { %704 = vrot.lane.b32.xlu0 %v4412_v33, %s5195_s19 }
  0xab   :  { %614 = vrot.lane.b32.xlu1 %v4411_v34, %s5194_s13 }
  0xae   :  { %708 = vrot.lane.b32.xlu0 %v4414_v41, %s5195_s19  ;;  %v5041_v41 = vld [vmem:[%s6405_s1 + $0x120] sm:$0xff]  }
  0xaf   :  { %706 = vrot.lane.b32.xlu1 %v4413_v42, %s5195_s19  ;;  %v5042_v42 = vld [vmem:[%s6405_s1 + $0x1b0] sm:$0xff]  }
  0xb3   :  { %710 = vrot.lane.b32.xlu1 %v4415_v59, %s5195_s19  ;;  %v5043_v59 = vld [vmem:[%s6405_s1 + $0x158] sm:$0xff]  }
  0xca   :  { %v5569_v46 = vpop.f32.mrf.mxu1 }
  0xcc   :  { %v4780_v47 = vpop.f32.mrf.mxu1 }
  0xcd   :  { %v5047_v47 = vld [vmem:[%s6405_s1 + $0x118] sm:$0xff]  }
  0xf4   :  { %v173_v37 = vpop.permute.xlu0 %172 }
  0xf5   :  { %v180_v45 = vrot.slane %v173_v37, 4 }
  0xf7   :  { %v185_v56 = vsel %vm184_vm14, %v173_v37, %v180_v45  ;;  %v5046_v37 = vld [vmem:[%s6405_s1 + $0x1e8] sm:$0xff]  }
  0xf8   :  { %193 = vst [vmem:[#allocation3 + $0x4] sm:$0xf] %v185_v56  ;;  %v177_v48 = vpop.permute.xlu0 %176 }
  0xf9   :  { %v175_v2 = vpop.permute.xlu1 %174  ;;  %v182_v50 = vrot.slane %v177_v48, 4 }
  0xfa   :  { %v181_v49 = vrot.slane %v175_v2, 4 }
  0xfb   :  { %v187_v52 = vsel %vm184_vm14, %v177_v48, %v182_v50 }
  0xfc   :  { %v186_v51 = vsel %vm184_vm14, %v175_v2, %v181_v49  ;;  %195 = vst [vmem:[#allocation3 + $0x4c] sm:$0xf] %v187_v52  ;;  %v226_v53 = vpop.permute.xlu0 %225  ;;  %v5048_v2 = vld [vmem:[%s6405_s1 + $0x1a8] sm:$0xff]  }
  0xfd   :  { %194 = vst [vmem:[#allocation3 + $0x28] sm:$0xf] %v186_v51  ;;  %v179_v7 = vpop.permute.xlu1 %178  ;;  %v233_v57 = vrot.slane %v226_v53, 4 }
  0xfe   :  { %v183_v54 = vrot.slane %v179_v7, 4 }
  0xff   :  { %v238_v61 = vsel %vm237_vm15, %v226_v53, %v233_v57  ;;  %v5052_v53 = vld [vmem:[%s6405_s1 + $0x1e0] sm:$0xff]  }
 0x100   :  { %v188_v58 = vsel %vm184_vm14, %v179_v7, %v183_v54  ;;  %246 = vst [vmem:[#allocation3 + $0x8] sm:$0xf] %v238_v61  ;;  %v370_v5 = vpop.permute.xlu0 %369  ;;  %v5051_v7 = vld [vmem:[%s6405_s1 + $0x150] sm:$0xff]   ;;  %v5055_v61 = vld [vmem:[%s6405_s1 + $0x1a0] sm:$0xff]  }
 0x101   :  { %196 = vst [vmem:[#allocation3 + $0x70] sm:$0xf] %v188_v58  ;;  %v228_v60 = vpop.permute.xlu1 %227  ;;  %v377_v1 = vrot.slane %v370_v5, 4  ;;  %v5054_v58 = vld [vmem:[%s6405_s1 + $0x110] sm:$0xff]  }
 0x102   :  { %v234_v6 = vrot.slane %v228_v60, 4 }
 0x103   :  { %v381_v3 = vsel %vm184_vm14, %v370_v5, %v377_v1  ;;  %v738_v25 = vld [vmem:[#allocation3 + $0x48] sm:$0xff] }
 0x104   :  { %v239_v10 = vsel %vm237_vm15, %v228_v60, %v234_v6  ;;  %v5019_v63 = vld [vmem:[#allocation3 + $0x4] ss:$36 sps:$4 sm:$0xff]   ;;  %389 = vst [vmem:[#allocation3 + $0x10] sm:$0xf] %v381_v3  ;;  %v466_v12 = vpop.permute.xlu0 %465  ;;  %v5049_v6 = vld [vmem:[#allocation3 + $0x54] ss:$36 sps:$4 sm:$0xff]  }
 0x105   :  { %247 = vst [vmem:[#allocation3 + $0x2c] sm:$0xf] %v239_v10  ;;  %v372_v11 = vpop.permute.xlu1 %371  ;;  %v473_v15 = vrot.slane %v466_v12, 4  ;;  %1527 = vmatprep.mubr.bf16.mxu1 %v5019_v63  ;;  %v5056_v3 = vld [vmem:[%s6405_s1 + $0x148] sm:$0xff]   ;;  %v5057_v63 = vld [vmem:[%s6405_s1 + $0x1d8] sm:$0xff]  }
 0x106   :  { %v378_v14 = vrot.slane %v372_v11, 4  ;;  %1528 = vmatmul.mubr.bf16.vlgmr.msra.gmra.mxu1 %v5023_v62 }
 0x107   :  { %v477_v17 = vsel %vm237_vm15, %v466_v12, %v473_v15  ;;  %4511 = vmatpush3.bf16.msra.mxu1 %v5025_v8  ;;  %v5059_v15 = vld [vmem:[%s6405_s1 + $0x198] sm:$0xff]  }
 0x108   :  { %v382_v16 = vsel %vm184_vm14, %v372_v11, %v378_v14  ;;  %v5026_v18 = vld [vmem:[#allocation3 + $0x4c] ss:$36 sps:$4 sm:$0xff]   ;;  %485 = vst [vmem:[#allocation3 + $0x14] sm:$0xf] %v477_v17  ;;  %v230_v9 = vpop.permute.xlu0 %229  ;;  %4512 = vmatprep.subr.bf16.mxu1 %v5029_v13 }
 0x109   :  { %390 = vst [vmem:[#allocation3 + $0x34] sm:$0xf] %v382_v16  ;;  %v468_v20 = vpop.permute.xlu1 %467  ;;  %v235_v23 = vrot.slane %v230_v9, 4  ;;  %v743_v24 = vld [vmem:[#allocation3 + $0x6c] sm:$0xff]  ;;  %1535 = vmatprep.mubr.bf16.mxu1 %v5026_v18  ;;  %v5060_v18 = vld [vmem:[%s6405_s1 + $0x140] sm:$0xff]  }
 0x10a   :  { %v474_v22 = vrot.slane %v468_v20, 4  ;;  %v4168_v34 = vcombine.low %v738_v25, %v743_v24  ;;  %v5058_v14 = vld [vmem:[%s6405_s1 + $0x108] sm:$0xff]   ;;  %v5063_v24 = vld [vmem:[%s6405_s1 + $0x190] sm:$0xff]  }
 0x10b   :  { %v240_v29 = vsel %vm237_vm15, %v230_v9, %v235_v23  ;;  %4513 = vmatpush3.bf16.msra.mxu1 %v5031_v19  ;;  %v5061_v19 = vld [vmem:[%s6405_s1 + $0x1d0] sm:$0xff]  }
 0x10c   :  { %v478_v28 = vsel %vm237_vm15, %v468_v20, %v474_v22  ;;  %v5036_v31 = vld [vmem:[#allocation3 + $0x8] ss:$36 sps:$4 sm:$0xff]   ;;  %248 = vst [vmem:[#allocation3 + $0x50] sm:$0xf] %v240_v29  ;;  %v374_v33 = vpop.permute.xlu0 %373  ;;  %4514 = vmatprep.subr.bf16.mxu1 %v5034_v21  ;;  %v5062_v21 = vld [vmem:[%s6405_s1 + $0x100] sm:$0xff]  }
 0x10d   :  { %486 = vst [vmem:[#allocation3 + $0x38] sm:$0xf] %v478_v28  ;;  %v232_v32 = vpop.permute.xlu1 %231  ;;  %v379_v38 = vrot.slane %v374_v33, 4  ;;  %1577 = vmatmul.mubr.bf16.vlgmr.msra.gmra.mxu0 %v5036_v31  ;;  %v5068_v28 = vld [vmem:[%s6405_s1 + $0x238] sm:$0xff]  }
 0x10e   :  { %v236_v36 = vrot.slane %v232_v32, 4  ;;  %1536 = vmatmul.mubr.bf16.gmra.mxu1 %v4168_v34  ;;  %4539 = vmatpush3.bf16.msra.mxu0 %v5038_v27  ;;  %v5065_v27 = vld [vmem:[%s6405_s1 + $0x1c8] sm:$0xff]  }
 0x10f   :  { %v383_v40 = vsel %vm184_vm14, %v374_v33, %v379_v38  ;;  %4515 = vmatpush3.bf16.msra.mxu1 %v5037_v26  ;;  %4540 = vmatprep.subr.bf16.mxu0 %v5040_v55  ;;  %v5071_v34 = vld [vmem:[%s6405_s1 + $0x188] sm:$0xff]  }
 0x110   :  { %v241_v39 = vsel %vm237_vm15, %v232_v32, %v236_v36  ;;  %391 = vst [vmem:[#allocation3 + $0x58] sm:$0xf] %v383_v40  ;;  %v470_v44 = vpop.permute.xlu0 %469  ;;  %4516 = vmatprep.subr.bf16.mxu1 %v5039_v35  ;;  %1584 = vmatprep.mubr.bf16.mxu0 %v5049_v6  ;;  %v5064_v55 = vld [vmem:[#allocation3 + $0x10] ss:$36 sps:$4 sm:$0xff]   ;;  %v5072_v36 = vld [vmem:[%s6405_s1 + $0x1c0] sm:$0xff]  }
 0x111   :  { %249 = vst [vmem:[#allocation3 + $0x74] sm:$0xf] %v241_v39  ;;  %v376_v43 = vpop.permute.xlu1 %375  ;;  %v475_v56 = vrot.slane %v470_v44, 4  ;;  %v5073_v40 = vld [vmem:[%s6405_s1 + $0x230] sm:$0xff]  }
 0x112   :  { %v380_v45 = vrot.slane %v376_v43, 4  ;;  %4541 = vmatpush3.bf16.msra.mxu0 %v5042_v42  ;;  %v5074_v42 = vld [vmem:[%s6405_s1 + $0x180] sm:$0xff]   ;;  %v1768_v6 = vld [vmem:[%s6406_s10 + $0x30] sm:$0xff] }
 0x113   :  { %v479_v49 = vsel %vm237_vm15, %v470_v44, %v475_v56  ;;  %4517 = vmatpush3.bf16.msra.mxu1 %v5041_v41  ;;  %4542 = vmatprep.subr.bf16.mxu0 %v5046_v37  ;;  %v5076_v37 = vld [vmem:[#allocation3 + $0x18] ss:$36 sps:$4 sm:$0xff]   ;;  %v5081_v56 = vld [vmem:[%s6405_s1 + $0x220] sm:$0xff]  }
 0x114   :  { %v384_v48 = vsel %vm184_vm14, %v376_v43, %v380_v45  ;;  %v5044_v50 = vld [vmem:[#allocation3 + $0x14] ss:$36 sps:$4 sm:$0xff]   ;;  %487 = vst [vmem:[#allocation3 + $0x5c] sm:$0xf] %v479_v49  ;;  %v609_v52 = vpop.permute.xlu0 %608  ;;  %4518 = vmatprep.subr.bf16.mxu1 %v5043_v59  ;;  %v5077_v43 = vld [vmem:[%s6405_s1 + $0x228] sm:$0xff]  }
 0x115   :  { %392 = vst [vmem:[#allocation3 + $0x7c] sm:$0xf] %v384_v48  ;;  %v472_v51 = vpop.permute.xlu1 %471  ;;  %v616_v57 = vrot.slane %v609_v52, 4  ;;  %1625 = vmatprep.mubr.bf16.mxu1 %v5044_v50  ;;  %v5084_v48 = vld [vmem:[%s6405_s1 + $0x210] sm:$0xff]   ;;  %v5085_v49 = vld [vmem:[%s6405_s1 + $0x208] sm:$0xff]   ;;  %v5086_v50 = vld [vmem:[%s6405_s1 + $0x200] sm:$0xff]  }
 0x116   :  { %v476_v54 = vrot.slane %v472_v51, 4  ;;  %4543 = vmatpush3.bf16.msra.mxu0 %v5048_v2  ;;  %v5082_v2 = vld [vmem:[#allocation3 + $0x60] ss:$36 sps:$4 sm:$0xff]  }
 0x117   :  { %v620_v5 = vsel %vm184_vm14, %v609_v52, %v616_v57  ;;  %4519 = vmatpush3.bf16.msra.mxu1 %v5047_v47  ;;  %4544 = vmatprep.subr.bf16.mxu0 %v5052_v53  ;;  %v5083_v47 = vld [vmem:[%s6405_s1 + $0x218] sm:$0xff]   ;;  %v1775_v53 = vld [vmem:[%s6406_s10 + $0x68] sm:$0xff] }
 0x118   :  { %v480_v60 = vsel %vm237_vm15, %v472_v51, %v476_v54  ;;  %v5053_v1 = vld [vmem:[#allocation3 + $0x50] ss:$36 sps:$4 sm:$0xff]   ;;  %628 = vst [vmem:[#allocation3 + $0x1c] sm:$0xf] %v620_v5  ;;  %v613_v10 = vpop.permute.xlu0 %612  ;;  %4520 = vmatprep.subr.bf16.mxu1 %v5051_v7  ;;  %v1777_v52 = vld [vmem:[%s6406_s10 + $0x78] sm:$0xff]  ;;  %v1774_v54 = vld [vmem:[%s6406_s10 + $0x60] sm:$0xff] }
 0x119   :  { %488 = vst [vmem:[#allocation3 + $0x80] sm:$0xf] %v480_v60  ;;  %v611_v8 = vpop.permute.xlu1 %610  ;;  %v618_v11 = vrot.slane %v613_v10, 4  ;;  %1585 = vmatmul.mubr.bf16.gmra.mxu0 %v5053_v1  ;;  %v1776_v7 = vld [vmem:[%s6406_s10 + $0x70] sm:$0xff]  ;;  %v1773_v57 = vld [vmem:[%s6406_s10 + $0x58] sm:$0xff]  ;;  %v1770_v60 = vld [vmem:[%s6406_s10 + $0x40] sm:$0xff] }
 0x11a   :  { %v617_v62 = vrot.slane %v611_v8, 4  ;;  %4545 = vmatpush3.bf16.msra.mxu0 %v5055_v61  ;;  %v1771_v61 = vld [vmem:[%s6406_s10 + $0x48] sm:$0xff]  ;;  %v1769_v5 = vld [vmem:[%s6406_s10 + $0x38] sm:$0xff] }
 0x11b   :  { %v622_v13 = vsel %vm184_vm14, %v613_v10, %v618_v11  ;;  %4521 = vmatpush3.bf16.msra.mxu1 %v5054_v58  ;;  %4546 = vmatprep.subr.bf16.mxu0 %v5057_v63  ;;  %v1772_v58 = vld [vmem:[%s6406_s10 + $0x50] sm:$0xff]  ;;  %v1767_v1 = vld [vmem:[%s6406_s10 + $0x28] sm:$0xff]  ;;  %v1765_v10 = vld [vmem:[%s6406_s10 + $0x18] sm:$0xff] }
 0x11c   :  { %v621_v12 = vsel %vm184_vm14, %v611_v8, %v617_v62  ;;  %630 = vst [vmem:[#allocation3 + $0x64] sm:$0xf] %v622_v13  ;;  %v705_v17 = vpop.permute.xlu0 %704  ;;  %4522 = vmatprep.subr.bf16.mxu1 %v5056_v3  ;;  %v5075_v59 = vld [vmem:[#allocation3 + $0x58] ss:$36 sps:$4 sm:$0xff]   ;;  %v1766_v8 = vld [vmem:[%s6406_s10 + $0x20] sm:$0xff]  ;;  %v1764_v3 = vld [vmem:[%s6406_s10 + $0x10] sm:$0xff] }
 0x11d   :  { %629 = vst [vmem:[#allocation3 + $0x40] sm:$0xf] %v621_v12  ;;  %v615_v16 = vpop.permute.xlu1 %614  ;;  %v712_v9 = vrot.slane %v705_v17, 4  ;;  %v1763_v63 = vld [vmem:[%s6406_s10 + $0x8] sm:$0xff]  ;;  %v1762_v62 = vld [vmem:[%s6406_s10] sm:$0xff] }
 0x11e   :  { %v619_v20 = vrot.slane %v615_v16, 4  ;;  %4547 = vmatpush3.bf16.msra.mxu0 %v5059_v15 }
 0x11f   :  { %v716_v23 = vsel %vm237_vm15, %v705_v17, %v712_v9  ;;  %4523 = vmatpush3.bf16.msra.mxu1 %v5058_v14  ;;  %4548 = vmatprep.subr.bf16.mxu0 %v5061_v19 }
 0x120   :  { %v623_v22 = vsel %vm184_vm14, %v615_v16, %v619_v20  ;;  %724 = vst [vmem:[#allocation3 + $0x20] sm:$0xf] %v716_v23  ;;  %v709_v26 = vpop.permute.xlu0 %708  ;;  %4524 = vmatprep.subr.bf16.mxu1 %v5060_v18  ;;  %v5069_v39 = vld [vmem:[#allocation3 + $0x5c] ss:$36 sps:$4 sm:$0xff]  }
 0x121   :  { %631 = vst [vmem:[#allocation3 + $0x88] sm:$0xf] %v623_v22  ;;  %v707_v25 = vpop.permute.xlu1 %706  ;;  %v714_v30 = vrot.slane %v709_v26, 4 }
 0x122   :  { %v713_v29 = vrot.slane %v707_v25, 4  ;;  %4549 = vmatpush3.bf16.msra.mxu0 %v5063_v24 }
 0x123   :  { %v718_v32 = vsel %vm237_vm15, %v709_v26, %v714_v30  ;;  %4525 = vmatpush3.bf16.msra.mxu1 %v5062_v21  ;;  %4550 = vmatprep.subr.bf16.mxu0 %v5065_v27 }
 0x124   :  { %v717_v31 = vsel %vm237_vm15, %v707_v25, %v713_v29  ;;  %v5066_v33 = vld [vmem:[#allocation3 + $0x1c] ss:$36 sps:$4 sm:$0xff]   ;;  %726 = vst [vmem:[#allocation3 + $0x68] sm:$0xf] %v718_v32  ;;  %4781 = vmatprep.subr.bf16.mxu1 %v5068_v28 }
 0x125   :  { %725 = vst [vmem:[#allocation3 + $0x44] sm:$0xf] %v717_v31  ;;  %v711_v35 = vpop.permute.xlu1 %710  ;;  %1674 = vmatprep.mubr.bf16.mxu0 %v5066_v33 }
 0x126   :  { %v715_v38 = vrot.slane %v711_v35, 4  ;;  %1626 = vmatmul.mubr.bf16.vlgmr.msra.gmra.mxu1 %v5064_v55  ;;  %4551 = vmatpush3.bf16.msra.mxu0 %v5071_v34 }
 0x127   :  { %1633 = vmatprep.mubr.bf16.mxu1 %v5069_v39  ;;  %4782 = vmatpush3.bf16.msra.mxu1 %v5068_v28 }
 0x128   :  { %v719_v41 = vsel %vm237_vm15, %v711_v35, %v715_v38  ;;  %4552 = vmatprep.subr.bf16.mxu0 %v5072_v36  ;;  %4783 = vmatprep.subr.bf16.mxu1 %v5073_v40  ;;  %v5078_v45 = vld [vmem:[#allocation3 + $0x64] ss:$36 sps:$4 sm:$0xff]   ;;  %v968_v35 = vshrl.u32 %v39_v0, 7 }
 0x129   :  { %727 = vst [vmem:[#allocation3 + $0x8c] sm:$0xf] %v719_v41 }
 0x12a   :  { %4553 = vmatpush3.bf16.msra.mxu0 %v5074_v42  ;;  %v5795_v38 = vsub.s32 0, %v968_v35 }
 0x12b   :  { %4784 = vmatpush3.bf16.msra.mxu1 %v5073_v40  ;;  %4801 = vmatprep.subr.mxu0 %v5191_v4 }
 0x12c   :  { %v5080_v44 = vld [vmem:[#allocation3 + $0x20] ss:$36 sps:$4 sm:$0xff]   ;;  %4785 = vmatprep.subr.bf16.mxu1 %v5077_v43 }
 0x12d   :  { %1675 = vmatmul.mubr.bf16.vlgmr.msra.gmra.mxu0 %v5076_v37 }
 0x12e   :  { %1634 = vmatmul.mubr.bf16.gmra.mxu1 %v5075_v59  ;;  %1682 = vmatprep.mubr.bf16.mxu0 %v5078_v45 }
 0x12f   :  { %4797 = vmatprep.mubr.bf16.mxu1 %v5080_v44  ;;  %4786 = vmatpush3.bf16.msra.mxu1 %v5077_v43  ;;  %v970_v44 = vrot.slane %v5569_v46, %v5795_v38 }
 0x130   :  { %4787 = vmatprep.subr.bf16.mxu1 %v5081_v56  ;;  %v5087_v51 = vld [vmem:[#allocation3 + $0x68] ss:$36 sps:$4 sm:$0xff]   ;;  %4802 = vmatpush3.msra.mxu0 %v1777_v52 }
 0x131   :  { %4803 = vmatprep.subr.mxu0 %v5191_v4 }
 0x132   :  { %4804 = vmatpush3.msra.mxu0 %v1776_v7 }
 0x133   :  { %4788 = vmatpush3.bf16.msra.mxu1 %v5081_v56  ;;  %4805 = vmatprep.subr.mxu0 %v5191_v4 }
 0x134   :  { %4789 = vmatprep.subr.bf16.mxu1 %v5083_v47  ;;  %4806 = vmatpush3.msra.mxu0 %v1775_v53 }
 0x135   :  { %1683 = vmatmul.mubr.bf16.gmra.mxu0 %v5082_v2  ;;  %4807 = vmatprep.subr.mxu0 %v5191_v4 }
 0x136   :  { %4833 = vmatprep.mubr.msk.f32.mxu0 %vm5193_vm8, %v5191_v4  ;;  %4808 = vmatpush3.msra.mxu0 %v1774_v54 }
 0x137   :  { %4790 = vmatpush3.bf16.msra.mxu1 %v5083_v47  ;;  %4809 = vmatprep.subr.mxu0 %v5191_v4 }
 0x138   :  { %4791 = vmatprep.subr.bf16.mxu1 %v5084_v48  ;;  %4810 = vmatpush3.msra.mxu0 %v1773_v57 }
 0x139   :  { %4811 = vmatprep.subr.mxu0 %v5191_v4 }
 0x13a   :  { %4812 = vmatpush3.msra.mxu0 %v1772_v58 }
 0x13b   :  { %4792 = vmatpush3.bf16.msra.mxu1 %v5084_v48  ;;  %4813 = vmatprep.subr.mxu0 %v5191_v4 }
 0x13c   :  { %4793 = vmatprep.subr.bf16.mxu1 %v5085_v49  ;;  %4814 = vmatpush3.msra.mxu0 %v1771_v61 }
 0x13d   :  { %4815 = vmatprep.subr.mxu0 %v5191_v4 }
 0x13e   :  { %4816 = vmatpush3.msra.mxu0 %v1770_v60 }
 0x13f   :  { %4794 = vmatpush3.bf16.msra.mxu1 %v5085_v49  ;;  %4817 = vmatprep.subr.mxu0 %v5191_v4 }
 0x140   :  { %4795 = vmatprep.subr.bf16.mxu1 %v5086_v50  ;;  %4818 = vmatpush3.msra.mxu0 %v1769_v5 }
 0x141   :  { %4819 = vmatprep.subr.mxu0 %v5191_v4 }
 0x142   :  { %4820 = vmatpush3.msra.mxu0 %v1768_v6 }
 0x143   :  { %4796 = vmatpush3.bf16.msra.mxu1 %v5086_v50  ;;  %4821 = vmatprep.subr.mxu0 %v5191_v4 }
 0x144   :  { %4836 = vmatprep.subr.mxu1 %v5191_v4  ;;  %4822 = vmatpush3.msra.mxu0 %v1767_v1 }
 0x145   :  { %4823 = vmatprep.subr.mxu0 %v5191_v4 }
 0x146   :  { %4798 = vmatmul.mubr.bf16.vlgmr.msra.gmra.mxu1 %v5087_v51  ;;  %4824 = vmatpush3.msra.mxu0 %v1766_v8 }
 0x147   :  { %4868 = vmatprep.mubr.msk.f32.mxu1 %vm5193_vm8, %v5191_v4  ;;  %4837 = vmatpush3.msra.mxu1 %v1777_v52 }
 0x148   :  { %4838 = vmatprep.subr.mxu1 %v5191_v4  ;;  %4825 = vmatprep.subr.mxu0 %v5191_v4 }
 0x149   :  { %4839 = vmatpush3.msra.mxu1 %v1776_v7  ;;  %4826 = vmatpush3.msra.mxu0 %v1765_v10 }
 0x14a   :  { %4840 = vmatprep.subr.mxu1 %v5191_v4  ;;  %4827 = vmatprep.subr.mxu0 %v5191_v4 }
 0x14b   :  { %4841 = vmatpush3.msra.mxu1 %v1775_v53  ;;  %4828 = vmatpush3.msra.mxu0 %v1764_v3 }
 0x14c   :  { %4842 = vmatprep.subr.mxu1 %v5191_v4  ;;  %4829 = vmatprep.subr.mxu0 %v5191_v4 }
 0x14d   :  { %4843 = vmatpush3.msra.mxu1 %v1774_v54  ;;  %4830 = vmatpush3.msra.mxu0 %v1763_v63 }
 0x14e   :  { %4844 = vmatprep.subr.mxu1 %v5191_v4  ;;  %4831 = vmatprep.subr.mxu0 %v5191_v4 }
 0x14f   :  { %4845 = vmatpush3.msra.mxu1 %v1773_v57  ;;  %4832 = vmatpush3.msra.mxu0 %v1762_v62 }
 0x150   :  { %4846 = vmatprep.subr.mxu1 %v5191_v4  ;;  %4871 = vmatprep.subr.mxu0 %v5191_v4 }
 0x151   :  { %4847 = vmatpush3.msra.mxu1 %v1772_v58 }
 0x152   :  { %4848 = vmatprep.subr.mxu1 %v5191_v4 }
 0x153   :  { %4849 = vmatpush3.msra.mxu1 %v1771_v61 }
 0x154   :  { %4850 = vmatprep.subr.mxu1 %v5191_v4 }
 0x155   :  { %4851 = vmatpush3.msra.mxu1 %v1770_v60 }
 0x156   :  { %4852 = vmatprep.subr.mxu1 %v5191_v4 }
 0x157   :  { %4853 = vmatpush3.msra.mxu1 %v1769_v5 }
 0x158   :  { %4854 = vmatprep.subr.mxu1 %v5191_v4 }
 0x159   :  { %4855 = vmatpush3.msra.mxu1 %v1768_v6 }
 0x15a   :  { %4856 = vmatprep.subr.mxu1 %v5191_v4 }
 0x15b   :  { %4857 = vmatpush3.msra.mxu1 %v1767_v1 }
 0x15c   :  { %4858 = vmatprep.subr.mxu1 %v5191_v4 }
 0x15d   :  { %4859 = vmatpush3.msra.mxu1 %v1766_v8 }
 0x15e   :  { %4860 = vmatprep.subr.mxu1 %v5191_v4 }
 0x15f   :  { %4861 = vmatpush3.msra.mxu1 %v1765_v10 }
 0x160   :  { %4862 = vmatprep.subr.mxu1 %v5191_v4 }
 0x161   :  { %4863 = vmatpush3.msra.mxu1 %v1764_v3 }
 0x162   :  { %4864 = vmatprep.subr.mxu1 %v5191_v4 }
 0x163   :  { %4865 = vmatpush3.msra.mxu1 %v1763_v63 }
 0x164   :  { %4866 = vmatprep.subr.mxu1 %v5191_v4 }
 0x165   :  { %4867 = vmatpush3.msra.mxu1 %v1762_v62 }
 0x1c6   :  { %v4470_v11 = vpop.f32.mrf.mxu1 }
 0x1c8   :  { %v4471_v12 = vpop.f32.mrf.mxu1 }
 0x1c9   :  { %v4472_v40 = vadd.f32 %v4471_v12, %v4470_v11 }
 0x1ca   :  { %v4473_v14 = vpop.f32.mrf.mxu1 }
 0x1cb   :  { %v1530_v2 = vadd.f32 %v4472_v40, %v970_v44 }
 0x1cc   :  { %v4474_v16 = vpop.f32.mrf.mxu1 }
 0x1cd   :  { %v4498_v13 = vpop.f32.mrf.mxu0  ;;  %v4475_v41 = vadd.f32 %v4474_v16, %v4473_v14 }
 0x1ce   :  { %v4476_v18 = vpop.f32.mrf.mxu1 }
 0x1cf   :  { %v4499_v15 = vpop.f32.mrf.mxu0  ;;  %v1533_v0 = vadd.f32 %v4475_v41, %v970_v44 }
 0x1d0   :  { %v4477_v20 = vpop.f32.mrf.mxu1  ;;  %v4500_v59 = vadd.f32 %v4499_v15, %v4498_v13 }
 0x1d1   :  { %v4501_v17 = vpop.f32.mrf.mxu0  ;;  %v4478_v42 = vadd.f32 %v4477_v20, %v4476_v18 }
 0x1d2   :  { %v4479_v21 = vpop.f32.mrf.mxu1  ;;  %v1579_v52 = vadd.f32 %v4500_v59, %v1530_v2  ;;  %v5189_v59 = vld [vmem:[%s6403_s9] sm:$0xff] }
 0x1d3   :  { %v4502_v19 = vpop.f32.mrf.mxu0  ;;  %v1538_v49 = vadd.f32 %v4478_v42, %v970_v44 }
 0x1d4   :  { %v4480_v23 = vpop.f32.mrf.mxu1  ;;  %v4503_v45 = vadd.f32 %v4502_v19, %v4501_v17 }
 0x1d5   :  { %v4481_v37 = vadd.f32 %v4480_v23, %v4479_v21 }
 0x1d6   :  { %v1582_v58 = vadd.f32 %v4503_v45, %v1533_v0 }
 0x1d7   :  { %v1541_v57 = vadd.f32 %v4481_v37, %v970_v44 }
 0x1d9   :  { %v4504_v9 = vpop.f32.mrf.mxu0 }
 0x1db   :  { %v4505_v22 = vpop.f32.mrf.mxu0 }
 0x1dc   :  { %v4506_v56 = vadd.f32 %v4505_v22, %v4504_v9 }
 0x1dd   :  { %v4507_v24 = vpop.f32.mrf.mxu0 }
 0x1de   :  { %v1587_v61 = vadd.f32 %v4506_v56, %v1538_v49 }
 0x1df   :  { %v4508_v26 = vpop.f32.mrf.mxu0 }
 0x1e0   :  { %v4509_v50 = vadd.f32 %v4508_v26, %v4507_v24 }
 0x1e2   :  { %v1590_v10 = vadd.f32 %v4509_v50, %v1541_v57 }
 0x1e6   :  { %v4526_v25 = vpop.f32.mrf.mxu1 }
 0x1e8   :  { %v4527_v27 = vpop.f32.mrf.mxu1 }
 0x1e9   :  { %v4528_v48 = vadd.f32 %v4527_v27, %v4526_v25 }
 0x1ea   :  { %v4529_v30 = vpop.f32.mrf.mxu1 }
 0x1eb   :  { %v1628_v5 = vadd.f32 %v4528_v48, %v1579_v52 }
 0x1ec   :  { %v4530_v32 = vpop.f32.mrf.mxu1 }
 0x1ed   :  { %v4554_v28 = vpop.f32.mrf.mxu0  ;;  %v4531_v7 = vadd.f32 %v4530_v32, %v4529_v30 }
 0x1ee   :  { %v4532_v34 = vpop.f32.mrf.mxu1 }
 0x1ef   :  { %v4555_v29 = vpop.f32.mrf.mxu0  ;;  %v1631_v63 = vadd.f32 %v4531_v7, %v1582_v58 }
 0x1f0   :  { %v4533_v36 = vpop.f32.mrf.mxu1  ;;  %v4556_v54 = vadd.f32 %v4555_v29, %v4554_v28 }
 0x1f1   :  { %v4557_v31 = vpop.f32.mrf.mxu0  ;;  %v4534_v53 = vadd.f32 %v4533_v36, %v4532_v34 }
 0x1f2   :  { %v4535_v43 = vpop.f32.mrf.mxu1  ;;  %v1677_v12 = vadd.f32 %v4556_v54, %v1628_v5 }
 0x1f3   :  { %v4558_v33 = vpop.f32.mrf.mxu0  ;;  %v1636_v62 = vadd.f32 %v4534_v53, %v1587_v61  ;;  %v1926_v53 = vld [vmem:[%s6408_s4] sm:$0x1] }
 0x1f4   :  { %v4536_v51 = vpop.f32.mrf.mxu1  ;;  %v4559_v1 = vadd.f32 %v4558_v33, %v4557_v31 }
 0x1f5   :  { %v4560_v55 = vpop.f32.mrf.mxu0  ;;  %v4537_v6 = vadd.f32 %v4536_v51, %v4535_v43  ;;  %v1922_v51 = vld [vmem:[%s6407_s3] sm:$0x1] }
 0x1f6   :  { %v1680_v17 = vadd.f32 %v4559_v1, %v1631_v63 }
 0x1f7   :  { %v4561_v39 = vpop.f32.mrf.mxu0  ;;  %v1639_v14 = vadd.f32 %v4537_v6, %v1590_v10 }
 0x1f8   :  { %v4562_v8 = vadd.f32 %v4561_v39, %v4560_v55 }
 0x1f9   :  { %v4563_v47 = vpop.f32.mrf.mxu0 }
 0x1fa   :  { %v1685_v15 = vadd.f32 %v4562_v8, %v1636_v62 }
 0x1fb   :  { %v4564_v60 = vpop.f32.mrf.mxu0 }
 0x1fc   :  { %v4565_v11 = vadd.f32 %v4564_v60, %v4563_v47 }
 0x1fe   :  { %v1688_v20 = vadd.f32 %v4565_v11, %v1639_v14 }
 0x206   :  { %v4799_v46 = vpop.f32.mrf.mxu1 }
 0x207   :  { %v5801_v19 = vadd.f32 %v4799_v46, %v1685_v15 }
 0x208   :  { %v1725_v3 = vpop.f32.mrf.mxu1 }
 0x209   :  { %v5799_v16 = vadd.f32 %v1725_v3, %v1677_v12  ;;  %v1751_v25 = vmul.f32 %v5801_v19, %v5801_v19 }
 0x20a   :  { %v4800_v13 = vpop.f32.mrf.mxu1 }
 0x20b   :  { %v1749_v21 = vmul.f32 %v5799_v16, %v5799_v16  ;;  %v1737_v22 = vadd.f32 %v4800_v13, %v1688_v20 }
 0x20c   :  { %v1728_v18 = vpop.f32.mrf.mxu1 }
 0x20d   :  { %v1729_v9 = vadd.f32 %v1728_v18, %v1680_v17  ;;  %v1752_v28 = vmul.f32 %v1737_v22, %v1737_v22 }
 0x20f   :  { %v1740_v23 = vadd.f32 %v1729_v9, %v5799_v16  ;;  %v1750_v24 = vmul.f32 %v1729_v9, %v1729_v9 }
 0x211   :  { %v1741_v26 = vadd.f32 %v1740_v23, %v5801_v19  ;;  %v1753_v27 = vadd.f32 %v1750_v24, %v1749_v21  ;;  %v2903_v23 = vld [vmem:[%s6409_s6] sm:$0x1]  ;;  %v5088_v24 = vld [vmem:[%s6410_s5 + $0x78] sm:$0xff]  }
 0x213   :  { %v1742_v29 = vadd.f32 %v1741_v26, %v1737_v22  ;;  %v1754_v30 = vadd.f32 %v1753_v27, %v1751_v25  ;;  %v5089_v25 = vld [vmem:[%s6410_s5 + $0x38] sm:$0xff]   ;;  %v5090_v26 = vld [vmem:[%s6410_s5 + $0x70] sm:$0xff]  }
 0x214   :  { %v5091_v27 = vld [vmem:[%s6410_s5 + $0x30] sm:$0xff]  }
 0x215   :  { %v1743_v31 = vrot.slane %v1742_v29, 4  ;;  %v1755_v32 = vadd.f32 %v1754_v30, %v1752_v28  ;;  %v5092_v28 = vld [vmem:[%s6410_s5 + $0x68] sm:$0xff]  }
 0x216   :  { %v5094_v30 = vld [vmem:[%s6410_s5 + $0x28] sm:$0xff]  }
 0x217   :  { %v1744_v33 = vadd.f32 %v1743_v31, %v1742_v29  ;;  %v1756_v34 = vrot.slane %v1755_v32, 4  ;;  %v5093_v29 = vld [vmem:[%s6410_s5 + $0xf8] sm:$0xff]  }
 0x218   :  { %4644 = vmatprep.subr.bf16.mxu1 %v5093_v29  ;;  %v5095_v31 = vld [vmem:[%s6410_s5 + $0xb8] sm:$0xff]  }
 0x219   :  { %v1745_v35 = vrot.slane %v1744_v33, 2  ;;  %v1757_v55 = vadd.f32 %v1756_v34, %v1755_v32  ;;  %v5096_v32 = vld [vmem:[%s6410_s5 + $0x60] sm:$0xff]  }
 0x21a   :  { %v5098_v34 = vld [vmem:[%s6410_s5 + $0x20] sm:$0xff]  }
 0x21b   :  { %v1746_v36 = vadd.f32 %v1745_v35, %v1744_v33  ;;  %v1758_v39 = vrot.slane %v1757_v55, 2  ;;  %v5097_v33 = vld [vmem:[%s6410_s5 + $0xf0] sm:$0xff]  }
 0x21c   :  { %v5099_v35 = vld [vmem:[%s6410_s5 + $0xb0] sm:$0xff]  }
 0x21d   :  { %v1747_v40 = vrot.slane %v1746_v36, 1  ;;  %v1759_v41 = vadd.f32 %v1758_v39, %v1757_v55  ;;  %v5100_v55 = vld [vmem:[%s6410_s5 + $0x58] sm:$0xff]  }
 0x21e   :  { %v5102_v39 = vld [vmem:[%s6410_s5 + $0x18] sm:$0xff]  }
 0x21f   :  { %v1748_v42 = vadd.f32 %v1747_v40, %v1746_v36  ;;  %v1760_v43 = vrot.slane %v1759_v41, 1  ;;  %v5101_v36 = vld [vmem:[%s6410_s5 + $0xe8] sm:$0xff]  }
 0x220   :  { %v5103_v40 = vld [vmem:[%s6410_s5 + $0xa8] sm:$0xff]  }
 0x221   :  { %4834 = vmatmul.mubr.f32.vlgmr.msra.gmra.mxu0 %v1748_v42  ;;  %v1761_v44 = vadd.f32 %v1760_v43, %v1759_v41  ;;  %v5104_v43 = vld [vmem:[%s6410_s5 + $0x50] sm:$0xff]  }
 0x222   :  { %4872 = vmatpush3.msra.mxu0 %v5189_v59  ;;  %4873 = vmatprep.mubr.msk.f32.mxu0 %vm5193_vm8, %v5191_v4 }
 0x223   :  { %4869 = vmatmul.mubr.f32.vlgmr.msra.gmra.mxu1 %v1761_v44  ;;  %4876 = vmatprep.subr.mxu0 %v5191_v4  ;;  %v5105_v44 = vld [vmem:[%s6410_s5 + $0xe0] sm:$0xff]  }
 0x224   :  { %4645 = vmatpush3.bf16.msra.mxu1 %v5095_v31 }
 0x225   :  { %4646 = vmatprep.subr.bf16.mxu1 %v5097_v33 }
 0x228   :  { %4647 = vmatpush3.bf16.msra.mxu1 %v5099_v35 }
 0x229   :  { %4648 = vmatprep.subr.bf16.mxu1 %v5101_v36 }
 0x22c   :  { %4649 = vmatpush3.bf16.msra.mxu1 %v5103_v40 }
 0x22d   :  { %4650 = vmatprep.subr.bf16.mxu1 %v5105_v44 }
 0x2e1   :  { %v1844_v37 = vpop.f32.mrf.mxu0 }
 0x2e2   :  { %v1918_v45 = vmul.f32 0.001953125, %v1844_v37  ;;  %v5107_v37 = vld [vmem:[%s6410_s5 + $0xa0] sm:$0xff]  }
 0x2e3   :  { %v4835_v56 = vpop.f32.mrf.mxu0  ;;  %v1914_v47 = vpop.f32.mrf.mxu1  ;;  %4651 = vmatpush3.bf16.msra.mxu1 %v5107_v37 }
 0x2e4   :  { %v1920_v2 = vmul.f32 %v1918_v45, %v1918_v45  ;;  %v1919_v48 = vmul.f32 0.001953125, %v1914_v47  ;;  %v5108_v47 = vld [vmem:[%s6410_s5 + $0x48] sm:$0xff]  }
 0x2e5   :  { %v4870_v0 = vpop.f32.mrf.mxu1 }
 0x2e6   :  { %v1921_v49 = vsub.f32 %v1919_v48, %v1920_v2  ;;  %v5109_v2 = vld [vmem:[%s6410_s5 + $0xd8] sm:$0xff]   ;;  %v5110_v48 = vld [vmem:[%s6410_s5 + $0x8] sm:$0xff]  }
 0x2e7   :  { %v5111_v0 = vld [vmem:[%s6410_s5 + $0x98] sm:$0xff]   ;;  %4652 = vmatprep.subr.bf16.mxu1 %v5109_v2 }
 0x2e8   :  { %v1923_v50 = vadd.f32 1e-05, %v1921_v49  ;;  %4653 = vmatpush3.bf16.msra.mxu1 %v5111_v0 }
 0x2ea   :  { %5185 = vrsqrt.f32 %v1923_v50 }
 0x2f7   :  { %v5186_v52 = vpop.eup %5185 }
 0x2f8   :  { %v1925_v7 = vmul.f32 %v5186_v52, %v1922_v51 }
 0x2fa   :  { %4874 = vmatmul.mubr.msk.f32.vlgmr.msra.gmra.mxu0 %vm56_vm3, %v1925_v7  ;;  %v1927_v54 = vmul.f32 %v1925_v7, %v1918_v45 }
 0x2fb   :  { %4877 = vmatpush3.msra.mxu0 %v5189_v59  ;;  %4878 = vmatprep.mubr.msk.f32.mxu0 %vm5193_vm8, %v5191_v4  ;;  %v5106_v59 = vld [vmem:[%s6410_s5 + $0x10] sm:$0xff]  }
 0x2fc   :  { %v1928_v57 = vsub.f32 %v1926_v53, %v1927_v54  ;;  %4881 = vmatprep.subr.mxu0 %v5191_v4 }
 0x2fe   :  { %4879 = vmatmul.mubr.msk.f32.vlgmr.msra.gmra.mxu0 %vm56_vm3, %v1928_v57 }
 0x2ff   :  { %4883 = vmatprep.mubr.msk.f32.mxu0 %vm5193_vm8, %v5191_v4 }
 0x3ba   :  { %v1998_v58 = vpop.f32.mrf.mxu0 }
 0x3bb   :  { %v2078_v61 = vrot.slane %v1998_v58, %v5795_v38 }
 0x3bc   :  { %v4875_v60 = vpop.f32.mrf.mxu0 }
 0x3bd   :  { %v2080_v46 = vmul.f32 %v2078_v61, %v1729_v9  ;;  %v2082_v6 = vmul.f32 %v2078_v61, %v1737_v22  ;;  %v2079_v8 = vmul.f32 %v2078_v61, %v5799_v16  ;;  %v2081_v10 = vmul.f32 %v2078_v61, %v5801_v19  ;;  %v2904_v19 = vld [vmem:[%s6403_s9] sm:$0xff] }
 0x3be   :  { %v2071_v5 = vpop.f32.mrf.mxu0  ;;  %4882 = vmatpush3.msra.mxu0 %v2904_v19  ;;  %v5112_v60 = vld [vmem:[%s6410_s5 + $0x40] sm:$0xff]  }
 0x3bf   :  { %v2086_v1 = vrot.slane %v2071_v5, %v5795_v38  ;;  %4884 = vmatmul.mubr.msk.f32.vlgmr.msra.gmra.mxu0 %vm56_vm3, %v2903_v23  ;;  %4616 = vmatprep.subr.bf16.mxu0 %v5088_v24 }
 0x3c0   :  { %v4880_v3 = vpop.f32.mrf.mxu0  ;;  %4617 = vmatpush3.bf16.msra.mxu0 %v5089_v25 }
 0x3c1   :  { %v2087_v63 = vadd.f32 %v2086_v1, %v2079_v8  ;;  %v2088_v62 = vadd.f32 %v2086_v1, %v2080_v46  ;;  %v2089_v11 = vadd.f32 %v2086_v1, %v2081_v10  ;;  %v2090_v12 = vadd.f32 %v2086_v1, %v2082_v6  ;;  %4618 = vmatprep.subr.bf16.mxu0 %v5090_v26 }
 0x3c3   :  { %v2091_v13 = vmax.f32 %v2087_v63, 0.0  ;;  %v2092_v14 = vmax.f32 %v2088_v62, 0.0  ;;  %v2093_v15 = vmax.f32 %v2089_v11, 0.0  ;;  %v2094_v17 = vmax.f32 %v2090_v12, 0.0 }
 0x3c4   :  { %4619 = vmatpush3.bf16.msra.mxu0 %v5091_v27  ;;  %v5114_v27 = vld [vmem:[%s6410_s5] sm:$0xff]  }
 0x3c5   :  { %v2099_v18 = vrot.slane %v2091_v13, 7  ;;  %v2100_v20 = vrot.slane %v2092_v14, 7  ;;  %v2102_v21 = vrot.slane %v2093_v15, 7  ;;  %v2103_v22 = vrot.slane %v2094_v17, 7  ;;  %4620 = vmatprep.subr.bf16.mxu0 %v5092_v28 }
 0x3c7   :  { %2105 = vrot.lane.b32.xlu0 %v2099_v18, %s5192_s25  ;;  %v2101_v9 = vsel %vm80_vm1, %v2099_v18, %v2100_v20  ;;  %v2104_v16 = vsel %vm80_vm1, %v2102_v21, %v2103_v22 }
 0x3c8   :  { %2107 = vrot.lane.b32.xlu1 %v2101_v9, %s5192_s25  ;;  %4621 = vmatpush3.bf16.msra.mxu0 %v5094_v30 }
 0x3c9   :  { %4622 = vmatprep.subr.bf16.mxu0 %v5096_v32  ;;  %v5115_v32 = vld [vmem:[%s6410_s5 + $0x90] sm:$0xff]  }
 0x3cb   :  { %2111 = vrot.lane.b32.xlu0 %v2102_v21, %s5192_s25 }
 0x3cc   :  { %2113 = vrot.lane.b32.xlu1 %v2104_v16, %s5192_s25  ;;  %4623 = vmatpush3.bf16.msra.mxu0 %v5098_v34 }
 0x3cd   :  { %4624 = vmatprep.subr.bf16.mxu0 %v5100_v55 }
 0x3cf   :  { %2109 = vrot.lane.b32.xlu0 %v2100_v20, %s5192_s25  ;;  %v5113_v20 = vld [vmem:[%s6410_s5 + $0xd0] sm:$0xff]  }
 0x3d0   :  { %2115 = vrot.lane.b32.xlu1 %v2103_v22, %s5192_s25  ;;  %4625 = vmatpush3.bf16.msra.mxu0 %v5102_v39  ;;  %v5119_v39 = vld [vmem:[%s6410_s5 + $0xc8] sm:$0xff]  }
 0x3d1   :  { %4626 = vmatprep.subr.bf16.mxu0 %v5104_v43  ;;  %4654 = vmatprep.subr.bf16.mxu1 %v5113_v20  ;;  %v5120_v43 = vld [vmem:[%s6410_s5 + $0x178] sm:$0xff]  }
 0x3d2   :  { %4655 = vmatpush3.bf16.msra.mxu1 %v5115_v32 }
 0x3d3   :  { %4656 = vmatprep.subr.bf16.mxu1 %v5119_v39 }
 0x3d4   :  { %4627 = vmatpush3.bf16.msra.mxu0 %v5106_v59 }
 0x3d5   :  { %4628 = vmatprep.subr.bf16.mxu0 %v5108_v47 }
 0x3d8   :  { %4629 = vmatpush3.bf16.msra.mxu0 %v5110_v48 }
 0x3d9   :  { %4630 = vmatprep.subr.bf16.mxu0 %v5112_v60 }
 0x3dc   :  { %4631 = vmatpush3.bf16.msra.mxu0 %v5114_v27 }
 0x3dd   :  { %4672 = vmatprep.subr.bf16.mxu0 %v5120_v43 }
 0x439   :  { %v2106_v41 = vpop.permute.xlu0 %2105 }
 0x43a   :  { %2123 = vst.msk [vmem:[#allocation2] sm:$0xfe] %vm105_vm9, %v2106_v41  ;;  %v2108_v42 = vpop.permute.xlu1 %2107 }
 0x43b   :  { %2124 = vst.msk [vmem:[#allocation2 + $0x8] sm:$0xfe] %vm54_vm0, %v2106_v41 }
 0x43c   :  { %2125 = vst.msk [vmem:[#allocation2 + $0x10] sm:$0xff] %vm108_vm10, %v2108_v42 }
 0x43d   :  { %2126 = vst.msk [vmem:[#allocation2 + $0x18] sm:$0xff] %vm56_vm3, %v2108_v42  ;;  %v2112_v45 = vpop.permute.xlu0 %2111 }
 0x43e   :  { %2129 = vst.msk [vmem:[#allocation2 + $0x30] sm:$0xfe] %vm105_vm9, %v2112_v45  ;;  %v2114_v56 = vpop.permute.xlu1 %2113 }
 0x43f   :  { %2130 = vst.msk [vmem:[#allocation2 + $0x38] sm:$0xfe] %vm54_vm0, %v2112_v45 }
 0x440   :  { %2131 = vst.msk [vmem:[#allocation2 + $0x40] sm:$0xff] %vm108_vm10, %v2114_v56 }
 0x441   :  { %2132 = vst.msk [vmem:[#allocation2 + $0x48] sm:$0xff] %vm56_vm3, %v2114_v56  ;;  %v2110_v49 = vpop.permute.xlu0 %2109  ;;  %v2159_v50 = vld [vmem:[#allocation2] sm:$0xff] }
 0x442   :  { %v2160_v51 = vld [vmem:[#allocation2 + $0x8] sm:$0xff]  ;;  %2127 = vst.msk [vmem:[#allocation2 + $0x20] sm:$0x1] %vm111_vm11, %v2110_v49  ;;  %v2116_v52 = vpop.permute.xlu1 %2115  ;;  %v4416_v57 = vpack.c.bf16 %v2159_v50, %v2159_v50  ;;  %v2309_v61 = vld [vmem:[#allocation2] sm:$0xfe] }
 0x443   :  { %2128 = vst.msk [vmem:[#allocation2 + $0x28] sm:$0x1] %vm58_vm6, %v2110_v49  ;;  %v4420_v7 = vpack.c.bf16 %v2160_v51, %v2159_v50  ;;  %v5929_v53 = vld [vmem:[#allocation2 + $0x10] sm:$0xff]  ;;  %2134 = vst.msk [vmem:[#allocation2 + $0x58] sm:$0x1] %vm58_vm6, %v2116_v52  ;;  %v2333_v62 = vrot.slane %v2309_v61, 1 }
 0x444   :  { %v5931_v54 = vld [vmem:[#allocation2 + $0x18] sm:$0xff]  ;;  %2133 = vst.msk [vmem:[#allocation2 + $0x50] sm:$0x1] %vm111_vm11, %v2116_v52  ;;  %v2310_v46 = vld [vmem:[#allocation2 + $0x8] sm:$0xfe]  ;;  %v4417_v5 = vpack.c.bf16 %v5929_v53, %v5929_v53  ;;  %v5955_v12 = vrot.slane %v5929_v53, 1 }
 0x445   :  { %v4421_v58 = vpack.c.bf16 %v5931_v54, %v5929_v53  ;;  %2187 = vrot.lane.b32.xlu0 %v4420_v7, %s5194_s13  ;;  %2155 = vst [vmem:[#allocation3] sm:$0xf] %v4416_v57  ;;  %v2163_v6 = vld [vmem:[#allocation2 + $0x30] sm:$0xff]  ;;  %v2405_v8 = vld [vmem:[#allocation2] sm:$0xfe]  ;;  %v2336_v13 = vrot.slane %v2310_v46, 1 }
 0x446   :  { %v2164_v1 = vld [vmem:[#allocation2 + $0x38] sm:$0xff]  ;;  %2156 = vst [vmem:[#allocation3 + $0x24] sm:$0xf] %v4417_v5  ;;  %v2337_v14 = vrot.slane %v5931_v54, 1  ;;  %v2406_v15 = vld [vmem:[#allocation2 + $0x8] sm:$0xfe]  ;;  %v4418_v16 = vpack.c.bf16 %v2163_v6, %v2163_v6  ;;  %v2335_v28 = vsel %vm262_vm13, %v2333_v62, %v5955_v12 }
 0x447   :  { %2189 = vrot.lane.b32.xlu1 %v4421_v58, %s5194_s13  ;;  %v5944_v10 = vpack.c.bf16 %v2164_v1, %v2163_v6  ;;  %v5946_v3 = vld [vmem:[#allocation2 + $0x40] sm:$0xff]  ;;  %v2429_v17 = vrot.slane %v2405_v8, 1  ;;  %v5960_v18 = vld [vmem:[#allocation2 + $0x30] sm:$0xfe]  ;;  %v2432_v25 = vrot.slane %v2406_v15, 1  ;;  %v5121_v51 = vld [vmem:[%s6410_s5 + $0x88] sm:$0xff]  }
 0x448   :  { %v5948_v63 = vld [vmem:[#allocation2 + $0x48] sm:$0xff]  ;;  %v4419_v19 = vpack.c.bf16 %v5946_v3, %v5946_v3  ;;  %v2338_v29 = vsel %vm262_vm13, %v2336_v13, %v2337_v14  ;;  %v2316_v30 = vld [vmem:[#allocation2 + $0x38] sm:$0xfe]  ;;  %v2343_v31 = vrot.slane %v5960_v18, 1  ;;  %2157 = vst [vmem:[#allocation3 + $0x48] sm:$0xf] %v4418_v16  ;;  %4657 = vmatpush3.bf16.msra.mxu1 %v5121_v51 }
 0x449   :  { %v5952_v11 = vpack.c.bf16 %v5948_v63, %v5946_v3  ;;  %2191 = vrot.lane.b32.xlu0 %v5944_v10, %s5194_s13  ;;  %v2313_v9 = vld [vmem:[#allocation2 + $0x20] sm:$0x1]  ;;  %v2411_v36 = vld [vmem:[#allocation2 + $0x30] sm:$0xfe]  ;;  %v5988_v40 = vrot.slane %v5946_v3, 1  ;;  %v4432_v44 = vpack.c.bf16 %v2338_v29, %v2335_v28  ;;  %v2431_v59 = vsel %vm262_vm13, %v2429_v17, %v5955_v12  ;;  %v5133_v29 = vld [vmem:[%s6410_s5 + $0x1f8] sm:$0xff]  }
 0x44a   :  { %v2314_v21 = vld [vmem:[#allocation2 + $0x28] sm:$0x1]  ;;  %v2409_v22 = vld [vmem:[#allocation2 + $0x20] sm:$0x1]  ;;  %v2339_v23 = vrot.slane %v2313_v9, 1  ;;  %v2434_v37 = vsel %vm262_vm13, %v2432_v25, %v2337_v14  ;;  %v2346_v48 = vrot.slane %v2316_v30, 1 }
 0x44b   :  { %2193 = vrot.lane.b32.xlu1 %v5952_v11, %s5194_s13  ;;  %v2341_v24 = vrot.slane %v2314_v21, 1  ;;  %v2410_v26 = vld [vmem:[#allocation2 + $0x28] sm:$0x1]  ;;  %2158 = vst [vmem:[#allocation3 + $0x6c] sm:$0xf] %v4419_v19  ;;  %v2435_v35 = vrot.slane %v2409_v22, 1  ;;  %v4436_v1 = vpack.c.bf16 %v2434_v37, %v2431_v59  ;;  %v2345_v15 = vsel %vm262_vm13, %v2343_v31, %v5988_v40 }
 0x44c   :  { %v2340_v33 = vsel %vm262_vm13, %v5955_v12, %v2339_v23  ;;  %v2437_v55 = vrot.slane %v2410_v26, 1  ;;  %v2319_v41 = vld [vmem:[#allocation2 + $0x50] sm:$0x1]  ;;  %v2412_v42 = vld [vmem:[#allocation2 + $0x38] sm:$0xfe]  ;;  %v2347_v0 = vrot.slane %v5948_v63, 1 }
 0x44d   :  { %2239 = vrot.lane.b32.xlu0 %v4420_v7, %s5195_s19  ;;  %v2342_v34 = vsel %vm262_vm13, %v2337_v14, %v2341_v24  ;;  %v2320_v45 = vld [vmem:[#allocation2 + $0x58] sm:$0x1]  ;;  %v2415_v56 = vld [vmem:[#allocation2 + $0x50] sm:$0x1]  ;;  %v2439_v49 = vrot.slane %v2411_v36, 1  ;;  %v2436_v52 = vsel %vm262_vm13, %v5955_v12, %v2435_v35  ;;  %v2349_v57 = vrot.slane %v2319_v41, 1 }
 0x44e   :  { %v2416_v47 = vld [vmem:[#allocation2 + $0x58] sm:$0x1]  ;;  %v4433_v2 = vpack.c.bf16 %v2342_v34, %v2340_v33  ;;  %v2547_v50 = vld [vmem:[#allocation2] sm:$0xfc]  ;;  %v2438_v7 = vsel %vm262_vm13, %v2337_v14, %v2437_v55  ;;  %v2351_v61 = vrot.slane %v2320_v45, 1  ;;  %v2445_v60 = vrot.slane %v2415_v56, 1 }
 0x44f   :  { %2241 = vrot.lane.b32.xlu1 %v4421_v58, %s5195_s19  ;;  %v2442_v58 = vrot.slane %v2412_v42, 1  ;;  %v2447_v46 = vrot.slane %v2416_v47, 1  ;;  %v2548_v5 = vld [vmem:[#allocation2 + $0x8] sm:$0xfc]  ;;  %v5125_v6 = vld [vmem:[%s6410_s5 + $0xc0] sm:$0xff]   ;;  %v2571_v8 = vrot.slane %v2547_v50, 2  ;;  %v4437_v14 = vpack.c.bf16 %v2438_v7, %v2436_v52 }
 0x450   :  { %v6009_v62 = vrot.slane %v5929_v53, 2  ;;  %v2551_v13 = vld [vmem:[#allocation2 + $0x20] sm:$0x3]  ;;  %v2348_v17 = vsel %vm262_vm13, %v2346_v48, %v2347_v0  ;;  %v6016_v18 = vsel %vm262_vm13, %v2439_v49, %v5988_v40  ;;  %v2552_v20 = vld [vmem:[#allocation2 + $0x28] sm:$0x3]  ;;  %4658 = vmatprep.subr.bf16.mxu1 %v5125_v6  ;;  %v2350_v9 = vsel %vm262_vm13, %v5988_v40, %v2349_v57 }
 0x451   :  { %2381 = vrot.lane.b32.xlu0 %v4432_v44, %s5194_s13  ;;  %v6022_v53 = vsel %vm262_vm13, %v2442_v58, %v2347_v0  ;;  %v2574_v21 = vrot.slane %v2548_v5, 2  ;;  %v6025_v22 = vrot.slane %v5931_v54, 2  ;;  %v5127_v16 = vld [vmem:[%s6410_s5 + $0x80] sm:$0xff]   ;;  %v2352_v19 = vsel %vm262_vm13, %v2347_v0, %v2351_v61  ;;  %v6039_v26 = vld [vmem:[#allocation2 + $0x30] sm:$0xfc] }
 0x452   :  { %v6034_v23 = vsel %vm262_vm13, %v5988_v40, %v2445_v60  ;;  %v6037_v24 = vsel %vm262_vm13, %v2347_v0, %v2447_v46  ;;  %v2577_v25 = vrot.slane %v2551_v13, 2  ;;  %v2579_v54 = vrot.slane %v2552_v20, 2  ;;  %4659 = vmatpush3.bf16.msra.mxu1 %v5127_v16  ;;  %v2263_v27 = vld [vmem:[#allocation2] sm:$0xfe]  ;;  %v2265_v28 = vld [vmem:[#allocation2 + $0x20] sm:$0x1] }
 0x453   :  { %2383 = vrot.lane.b32.xlu1 %v4433_v2, %s5194_s13  ;;  %v4434_v30 = vpack.c.bf16 %v2348_v17, %v2345_v15  ;;  %v4438_v31 = vpack.c.bf16 %v6022_v53, %v6016_v18  ;;  %v6048_v32 = vsel %vm501_vm12, %v2571_v8, %v6009_v62  ;;  %v6050_v33 = vld [vmem:[#allocation2 + $0x38] sm:$0xfc]  ;;  %v4435_v34 = vpack.c.bf16 %v2352_v19, %v2350_v9  ;;  %v6060_v36 = vld [vmem:[#allocation2 + $0x50] sm:$0x3]  ;;  %v2558_v47 = vld [vmem:[#allocation2 + $0x58] sm:$0x3] }
 0x454   :  { %v4439_v35 = vpack.c.bf16 %v6037_v24, %v6034_v23  ;;  %v6058_v55 = vsel %vm501_vm12, %v2574_v21, %v6025_v22  ;;  %4700 = vmatprep.subr.bf16.mxu1 %v5133_v29  ;;  %v6066_v39 = vsel %vm501_vm12, %v6009_v62, %v2577_v25  ;;  %v2275_v41 = vrot.slane %v2263_v27, 1  ;;  %v2266_v43 = vld [vmem:[#allocation2 + $0x30] sm:$0xfe]  ;;  %v2268_v45 = vld [vmem:[#allocation2 + $0x50] sm:$0x1]  ;;  %v2505_v5 = vld [vmem:[#allocation2 + $0x40] sm:$0xff] }
 0x455   :  { %2477 = vrot.lane.b32.xlu0 %v4436_v1, %s5195_s19  ;;  %v2278_v42 = vrot.slane %v2265_v28, 1  ;;  %v6071_v44 = vsel %vm501_vm12, %v6025_v22, %v2579_v54  ;;  %v6074_v59 = vrot.slane %v5946_v3, 2  ;;  %v2584_v37 = vrot.slane %v6050_v33, 2  ;;  %v2501_v49 = vld [vmem:[#allocation2] sm:$0xfc] }
 0x456   :  { %v6078_v56 = vrot.slane %v5948_v63, 2  ;;  %v2587_v2 = vrot.slane %v6060_v36, 2  ;;  %v2277_v48 = vsel %vm262_vm13, %v2275_v41, %v5955_v12  ;;  %v2283_v52 = vrot.slane %v2268_v45, 1  ;;  %v2502_v63 = vld [vmem:[#allocation2 + $0x10] sm:$0xff]  ;;  %v2503_v7 = vld [vmem:[#allocation2 + $0x20] sm:$0x3] }
 0x457   :  { %2479 = vrot.lane.b32.xlu1 %v4437_v14, %s5195_s19  ;;  %v2279_v0 = vsel %vm262_vm13, %v5955_v12, %v2278_v42  ;;  %v4428_v3 = vpack.c.bf16 %v2277_v48, %v2277_v48  ;;  %v2504_v57 = vld [vmem:[#allocation2 + $0x30] sm:$0xfc]  ;;  %v2513_v61 = vrot.slane %v2501_v49, 2  ;;  %v2514_v60 = vrot.slane %v2502_v63, 2  ;;  %v2506_v12 = vld [vmem:[#allocation2 + $0x50] sm:$0x3] }
 0x458   :  { %v4429_v50 = vpack.c.bf16 %v2279_v0, %v2279_v0  ;;  %v2516_v46 = vrot.slane %v2503_v7, 2  ;;  %v2284_v6 = vsel %vm262_vm13, %v5988_v40, %v2283_v52  ;;  %v2518_v1 = vrot.slane %v2504_v57, 2  ;;  %v2643_v15 = vld [vmem:[#allocation2] sm:$0xfc]  ;;  %v2644_v9 = vld [vmem:[#allocation2 + $0x8] sm:$0xfc] }
 0x459   :  { %2243 = vrot.lane.b32.xlu0 %v5944_v10, %s5195_s19  ;;  %v2581_v10 = vrot.slane %v6039_v26, 2  ;;  %2305 = vst [vmem:[#allocation3 + $0xc] sm:$0xf] %v4428_v3  ;;  %v2519_v8 = vrot.slane %v2505_v5, 2  ;;  %v2521_v13 = vrot.slane %v2506_v12, 2  ;;  %v2589_v14 = vrot.slane %v2558_v47, 2 }
 0x45a   :  { %2306 = vst [vmem:[#allocation3 + $0x30] sm:$0xf] %v4429_v50  ;;  %v4431_v17 = vpack.c.bf16 %v2284_v6, %v2284_v6  ;;  %v2515_v18 = vsel %vm501_vm12, %v2513_v61, %v2514_v60  ;;  %v2517_v20 = vsel %vm501_vm12, %v2514_v60, %v2516_v46  ;;  %v2647_v19 = vld [vmem:[#allocation2 + $0x20] sm:$0x3]  ;;  %v2648_v23 = vld [vmem:[#allocation2 + $0x28] sm:$0x3]  ;;  %v4444_v26 = vpack.c.bf16 %v6058_v55, %v6048_v32 }
 0x45b   :  { %2245 = vrot.lane.b32.xlu1 %v5952_v11, %s5195_s19  ;;  %v2280_v11 = vrot.slane %v2266_v43, 1  ;;  %v4440_v53 = vpack.c.bf16 %v2515_v18, %v2515_v18  ;;  %v4441_v21 = vpack.c.bf16 %v2517_v20, %v2517_v20  ;;  %v2520_v16 = vsel %vm501_vm12, %v2518_v1, %v2519_v8  ;;  %v2650_v55 = vld [vmem:[#allocation2 + $0x38] sm:$0xfc]  ;;  %v2653_v36 = vld [vmem:[#allocation2 + $0x50] sm:$0x3] }
 0x45c   :  { %2308 = vst [vmem:[#allocation3 + $0x78] sm:$0xf] %v4431_v17  ;;  %v4442_v24 = vpack.c.bf16 %v2520_v16, %v2520_v16  ;;  %v4445_v54 = vpack.c.bf16 %v6071_v44, %v6066_v39  ;;  %v2583_v27 = vsel %vm501_vm12, %v2581_v10, %v6074_v59  ;;  %v2667_v28 = vrot.slane %v2643_v15, 2  ;;  %v2654_v39 = vld [vmem:[#allocation2 + $0x58] sm:$0x3] }
 0x45d   :  { %2385 = vrot.lane.b32.xlu0 %v4434_v30, %s5194_s13  ;;  %v2282_v51 = vsel %vm262_vm13, %v2280_v11, %v5988_v40  ;;  %v2522_v40 = vsel %vm501_vm12, %v2519_v8, %v2521_v13  ;;  %2543 = vst [vmem:[#allocation3 + $0x18] sm:$0xf] %v4440_v53  ;;  %2544 = vst [vmem:[#allocation3 + $0x3c] sm:$0xf] %v4441_v21  ;;  %v2586_v29 = vsel %vm501_vm12, %v2584_v37, %v6078_v56  ;;  %v5122_v18 = vld [vmem:[%s6410_s5 + $0x138] sm:$0xff]  }
 0x45e   :  { %v4430_v58 = vpack.c.bf16 %v2282_v51, %v2282_v51  ;;  %v4443_v25 = vpack.c.bf16 %v2522_v40, %v2522_v40  ;;  %v2588_v30 = vsel %vm501_vm12, %v6074_v59, %v2587_v2  ;;  %v2670_v33 = vrot.slane %v2644_v9, 2  ;;  %2545 = vst [vmem:[#allocation3 + $0x60] sm:$0xf] %v4442_v24  ;;  %v5116_v53 = vld [vmem:[#allocation3] ss:$36 sps:$4 sm:$0xff]  }
 0x45f   :  { %2387 = vrot.lane.b32.xlu1 %v4435_v34, %s5194_s13  ;;  %v2673_v32 = vrot.slane %v2647_v19, 2  ;;  %v2675_v34 = vrot.slane %v2648_v23, 2  ;;  %v4446_v10 = vpack.c.bf16 %v2586_v29, %v2583_v27  ;;  %v2669_v42 = vsel %vm501_vm12, %v2667_v28, %v6009_v62  ;;  %v5126_v19 = vld [vmem:[%s6410_s5 + $0x170] sm:$0xff]  }
 0x460   :  { %2307 = vst [vmem:[#allocation3 + $0x54] sm:$0xf] %v4430_v58  ;;  %2546 = vst [vmem:[#allocation3 + $0x84] sm:$0xf] %v4443_v25  ;;  %v2672_v43 = vsel %vm501_vm12, %v2670_v33, %v6025_v22  ;;  %v2680_v37 = vrot.slane %v2650_v55, 2  ;;  %v2683_v47 = vrot.slane %v2653_v36, 2 }
 0x461   :  { %2481 = vrot.lane.b32.xlu0 %v4438_v31, %s5195_s19  ;;  %v2590_v31 = vsel %vm501_vm12, %v6078_v56, %v2589_v14  ;;  %v2674_v45 = vsel %vm501_vm12, %v6009_v62, %v2673_v32  ;;  %v2676_v11 = vsel %vm501_vm12, %v6025_v22, %v2675_v34  ;;  %v2685_v2 = vrot.slane %v2654_v39, 2  ;;  %v5128_v27 = vld [vmem:[%s6410_s5 + $0x130] sm:$0xff]   ;;  %v5135_v55 = vld [vmem:[%s6410_s5 + $0x1b8] sm:$0xff]  }
 0x462   :  { %v4447_v41 = vpack.c.bf16 %v2590_v31, %v2588_v30  ;;  %v4448_v48 = vpack.c.bf16 %v2672_v43, %v2669_v42  ;;  %v4449_v0 = vpack.c.bf16 %v2676_v11, %v2674_v45  ;;  %v2682_v3 = vsel %vm501_vm12, %v2680_v37, %v6078_v56  ;;  %v5132_v30 = vld [vmem:[%s6410_s5 + $0x168] sm:$0xff]   ;;  %v5136_v37 = vld [vmem:[%s6410_s5 + $0x160] sm:$0xff]   ;;  %v5137_v45 = vld [vmem:[%s6410_s5 + $0x1f0] sm:$0xff]  }
 0x463   :  { %2483 = vrot.lane.b32.xlu1 %v4439_v35, %s5195_s19  ;;  %v2649_v35 = vld [vmem:[#allocation2 + $0x30] sm:$0xfc]  ;;  %v2684_v62 = vsel %vm501_vm12, %v6074_v59, %v2683_v47  ;;  %v2686_v22 = vsel %vm501_vm12, %v6078_v56, %v2685_v2 }
 0x464   :  { %v2677_v44 = vrot.slane %v2649_v35, 2  ;;  %v4451_v51 = vpack.c.bf16 %v2686_v22, %v2684_v62  ;;  %v5134_v35 = vld [vmem:[%s6410_s5 + $0x128] sm:$0xff]   ;;  %v5140_v22 = vld [vmem:[%s6410_s5 + $0x158] sm:$0xff]  }
 0x465   :  { %2619 = vrot.lane.b32.xlu0 %v4444_v26, %s5194_s13 }
 0x466   :  { %v2679_v49 = vsel %vm501_vm12, %v2677_v44, %v6074_v59 }
 0x467   :  { %2621 = vrot.lane.b32.xlu1 %v4445_v54, %s5194_s13  ;;  %v4450_v50 = vpack.c.bf16 %v2682_v3, %v2679_v49  ;;  %v5139_v49 = vld [vmem:[%s6410_s5 + $0x1b0] sm:$0xff]  }
 0x469   :  { %2623 = vrot.lane.b32.xlu0 %v4446_v10, %s5194_s13 }
 0x46b   :  { %2625 = vrot.lane.b32.xlu1 %v4447_v41, %s5194_s13  ;;  %v5131_v41 = vld [vmem:[#allocation3 + $0xc] ss:$36 sps:$4 sm:$0xff]  }
 0x46c   :  { %3587 = vmatprep.mubr.bf16.mxu1 %v5131_v41 }
 0x46d   :  { %2715 = vrot.lane.b32.xlu0 %v4448_v48, %s5195_s19 }
 0x46f   :  { %2717 = vrot.lane.b32.xlu1 %v4449_v0, %s5195_s19  ;;  %v5138_v0 = vld [vmem:[%s6410_s5 + $0x120] sm:$0xff]  }
 0x471   :  { %2719 = vrot.lane.b32.xlu0 %v4450_v50, %s5195_s19  ;;  %v5144_v50 = vld [vmem:[%s6410_s5 + $0x1e8] sm:$0xff]  }
 0x473   :  { %2721 = vrot.lane.b32.xlu1 %v4451_v51, %s5195_s19 }
 0x47f   :  { %v6133_v52 = vpop.f32.mrf.mxu0 }
 0x481   :  { %v4885_v63 = vpop.f32.mrf.mxu0 }
 0x4b7   :  { %v2188_v7 = vpop.permute.xlu0 %2187 }
 0x4b8   :  { %v2195_v57 = vrot.slane %v2188_v7, 4 }
 0x4b9   :  { %v2190_v58 = vpop.permute.xlu1 %2189 }
 0x4ba   :  { %v2196_v61 = vrot.slane %v2190_v58, 4  ;;  %v2199_v59 = vsel %vm184_vm14, %v2188_v7, %v2195_v57  ;;  %v5145_v7 = vld [vmem:[%s6410_s5 + $0x118] sm:$0xff]  }
 0x4bb   :  { %2207 = vst [vmem:[#allocation3 + $0x4] sm:$0xf] %v2199_v59  ;;  %v2192_v60 = vpop.permute.xlu0 %2191  ;;  %v5146_v59 = vld [vmem:[%s6410_s5 + $0x1a8] sm:$0xff]  }
 0x4bc   :  { %v2200_v56 = vsel %vm184_vm14, %v2190_v58, %v2196_v61  ;;  %v2197_v46 = vrot.slane %v2192_v60, 4 }
 0x4bd   :  { %2208 = vst [vmem:[#allocation3 + $0x28] sm:$0xf] %v2200_v56  ;;  %v2194_v5 = vpop.permute.xlu1 %2193 }
 0x4be   :  { %v2198_v12 = vrot.slane %v2194_v5, 4  ;;  %v2201_v6 = vsel %vm184_vm14, %v2192_v60, %v2197_v46  ;;  %v5149_v46 = vld [vmem:[%s6410_s5 + $0x150] sm:$0xff]  }
 0x4bf   :  { %2209 = vst [vmem:[#allocation3 + $0x4c] sm:$0xf] %v2201_v6  ;;  %v2240_v8 = vpop.permute.xlu0 %2239 }
 0x4c0   :  { %v2202_v1 = vsel %vm184_vm14, %v2194_v5, %v2198_v12  ;;  %v2247_v13 = vrot.slane %v2240_v8, 4  ;;  %v5150_v5 = vld [vmem:[%s6410_s5 + $0x1e0] sm:$0xff]  }
 0x4c1   :  { %2210 = vst [vmem:[#allocation3 + $0x70] sm:$0xf] %v2202_v1  ;;  %v2242_v14 = vpop.permute.xlu1 %2241  ;;  %v5152_v1 = vld [vmem:[%s6410_s5 + $0x110] sm:$0xff]  }
 0x4c2   :  { %v2248_v15 = vrot.slane %v2242_v14, 4  ;;  %v2251_v17 = vsel %vm237_vm15, %v2240_v8, %v2247_v13  ;;  %v5153_v8 = vld [vmem:[%s6410_s5 + $0x1a0] sm:$0xff]  }
 0x4c3   :  { %2259 = vst [vmem:[#allocation3 + $0x8] sm:$0xf] %v2251_v17  ;;  %v2382_v9 = vpop.permute.xlu0 %2381 }
 0x4c4   :  { %v2252_v20 = vsel %vm237_vm15, %v2242_v14, %v2248_v15  ;;  %v5118_v21 = vld [vmem:[#allocation3 + $0x4] ss:$36 sps:$4 sm:$0xff]   ;;  %v2389_v16 = vrot.slane %v2382_v9, 4  ;;  %v5147_v15 = vld [vmem:[#allocation3 + $0x54] ss:$36 sps:$4 sm:$0xff]  }
 0x4c5   :  { %2260 = vst [vmem:[#allocation3 + $0x2c] sm:$0xf] %v2252_v20  ;;  %v2384_v40 = vpop.permute.xlu1 %2383  ;;  %3538 = vmatprep.mubr.bf16.mxu0 %v5118_v21 }
 0x4c6   :  { %v2390_v23 = vrot.slane %v2384_v40, 4  ;;  %v2393_v24 = vsel %vm184_vm14, %v2382_v9, %v2389_v16  ;;  %3539 = vmatmul.mubr.bf16.vlgmr.msra.gmra.mxu0 %v5116_v53  ;;  %v2749_v33 = vld [vmem:[#allocation3 + $0x48] sm:$0xff]  ;;  %v5155_v53 = vld [vmem:[%s6410_s5 + $0x1d8] sm:$0xff]  }
 0x4c7   :  { %2401 = vst [vmem:[#allocation3 + $0x10] sm:$0xf] %v2393_v24  ;;  %v2478_v26 = vpop.permute.xlu0 %2477  ;;  %4673 = vmatpush3.bf16.msra.mxu0 %v5122_v18  ;;  %v5154_v9 = vld [vmem:[%s6410_s5 + $0x148] sm:$0xff]   ;;  %v5157_v24 = vld [vmem:[%s6410_s5 + $0x198] sm:$0xff]  }
 0x4c8   :  { %v2394_v25 = vsel %vm184_vm14, %v2384_v40, %v2390_v23  ;;  %v5123_v54 = vld [vmem:[#allocation3 + $0x4c] ss:$36 sps:$4 sm:$0xff]   ;;  %v2485_v28 = vrot.slane %v2478_v26, 4  ;;  %4674 = vmatprep.subr.bf16.mxu0 %v5126_v19 }
 0x4c9   :  { %2402 = vst [vmem:[#allocation3 + $0x34] sm:$0xf] %v2394_v25  ;;  %v2480_v29 = vpop.permute.xlu1 %2479  ;;  %v2754_v32 = vld [vmem:[#allocation3 + $0x6c] sm:$0xff]  ;;  %3546 = vmatprep.mubr.bf16.mxu0 %v5123_v54  ;;  %v5158_v54 = vld [vmem:[%s6410_s5 + $0x140] sm:$0xff]  }
 0x4ca   :  { %v2486_v31 = vrot.slane %v2480_v29, 4  ;;  %v2489_v34 = vsel %vm237_vm15, %v2478_v26, %v2485_v28  ;;  %v4297_v44 = vcombine.low %v2749_v33, %v2754_v32  ;;  %v5156_v23 = vld [vmem:[%s6410_s5 + $0x108] sm:$0xff]   ;;  %v5160_v33 = vld [vmem:[%s6410_s5 + $0x100] sm:$0xff]   ;;  %v5161_v32 = vld [vmem:[%s6410_s5 + $0x190] sm:$0xff]  }
 0x4cb   :  { %2497 = vst [vmem:[#allocation3 + $0x14] sm:$0xf] %v2489_v34  ;;  %v2244_v39 = vpop.permute.xlu0 %2243  ;;  %4675 = vmatpush3.bf16.msra.mxu0 %v5128_v27  ;;  %v5159_v27 = vld [vmem:[%s6410_s5 + $0x1d0] sm:$0xff]  }
 0x4cc   :  { %v2490_v36 = vsel %vm237_vm15, %v2480_v29, %v2486_v31  ;;  %v5129_v10 = vld [vmem:[#allocation3 + $0x8] ss:$36 sps:$4 sm:$0xff]   ;;  %v2249_v42 = vrot.slane %v2244_v39, 4  ;;  %4676 = vmatprep.subr.bf16.mxu0 %v5132_v30 }
 0x4cd   :  { %2498 = vst [vmem:[#allocation3 + $0x38] sm:$0xf] %v2490_v36  ;;  %v2246_v43 = vpop.permute.xlu1 %2245  ;;  %3588 = vmatmul.mubr.bf16.vlgmr.msra.gmra.mxu1 %v5129_v10  ;;  %v5166_v36 = vld [vmem:[%s6410_s5 + $0x238] sm:$0xff]  }
 0x4ce   :  { %v2250_v11 = vrot.slane %v2246_v43, 4  ;;  %v2253_v47 = vsel %vm237_vm15, %v2244_v39, %v2249_v42  ;;  %3547 = vmatmul.mubr.bf16.gmra.mxu0 %v4297_v44  ;;  %4701 = vmatpush3.bf16.msra.mxu1 %v5135_v55  ;;  %v5162_v55 = vld [vmem:[%s6410_s5 + $0x1c8] sm:$0xff]  }
 0x4cf   :  { %2261 = vst [vmem:[#allocation3 + $0x50] sm:$0xf] %v2253_v47  ;;  %v2386_v48 = vpop.permute.xlu0 %2385  ;;  %4677 = vmatpush3.bf16.msra.mxu0 %v5134_v35  ;;  %4702 = vmatprep.subr.bf16.mxu1 %v5137_v45  ;;  %v5169_v44 = vld [vmem:[%s6410_s5 + $0x188] sm:$0xff]   ;;  %v5170_v47 = vld [vmem:[%s6410_s5 + $0x1c0] sm:$0xff]  }
 0x4d0   :  { %v2254_v2 = vsel %vm237_vm15, %v2246_v43, %v2250_v11  ;;  %v2391_v3 = vrot.slane %v2386_v48, 4  ;;  %4678 = vmatprep.subr.bf16.mxu0 %v5136_v37  ;;  %3595 = vmatprep.mubr.bf16.mxu1 %v5147_v15  ;;  %v5141_v37 = vld [vmem:[#allocation3 + $0x10] ss:$36 sps:$4 sm:$0xff]   ;;  %v3781_v15 = vld [vmem:[%s6406_s10 + $0x40] sm:$0xff] }
 0x4d1   :  { %2262 = vst [vmem:[#allocation3 + $0x74] sm:$0xf] %v2254_v2  ;;  %v2388_v62 = vpop.permute.xlu1 %2387 }
 0x4d2   :  { %v2392_v51 = vrot.slane %v2388_v62, 4  ;;  %v2395_v63 = vsel %vm184_vm14, %v2386_v48, %v2391_v3  ;;  %4703 = vmatpush3.bf16.msra.mxu1 %v5139_v49 }
 0x4d3   :  { %2403 = vst [vmem:[#allocation3 + $0x58] sm:$0xf] %v2395_v63  ;;  %v2482_v58 = vpop.permute.xlu0 %2481  ;;  %4679 = vmatpush3.bf16.msra.mxu0 %v5138_v0  ;;  %4704 = vmatprep.subr.bf16.mxu1 %v5144_v50  ;;  %v5171_v0 = vld [vmem:[%s6410_s5 + $0x230] sm:$0xff]  }
 0x4d4   :  { %v2396_v57 = vsel %vm184_vm14, %v2388_v62, %v2392_v51  ;;  %v5143_v61 = vld [vmem:[#allocation3 + $0x14] ss:$36 sps:$4 sm:$0xff]   ;;  %v2487_v56 = vrot.slane %v2482_v58, 4  ;;  %4680 = vmatprep.subr.bf16.mxu0 %v5140_v22  ;;  %v5172_v62 = vld [vmem:[%s6410_s5 + $0x180] sm:$0xff]   ;;  %v5174_v22 = vld [vmem:[%s6410_s5 + $0x228] sm:$0xff]  }
 0x4d5   :  { %2404 = vst [vmem:[#allocation3 + $0x7c] sm:$0xf] %v2396_v57  ;;  %v2484_v60 = vpop.permute.xlu1 %2483  ;;  %3636 = vmatprep.mubr.bf16.mxu0 %v5143_v61  ;;  %v5163_v51 = vld [vmem:[#allocation3 + $0x18] ss:$36 sps:$4 sm:$0xff]   ;;  %v5178_v57 = vld [vmem:[%s6410_s5 + $0x220] sm:$0xff]  }
 0x4d6   :  { %v2488_v12 = vrot.slane %v2484_v60, 4  ;;  %v2491_v6 = vsel %vm237_vm15, %v2482_v58, %v2487_v56  ;;  %4705 = vmatpush3.bf16.msra.mxu1 %v5146_v59  ;;  %v5180_v58 = vld [vmem:[%s6410_s5 + $0x218] sm:$0xff]   ;;  %v5179_v61 = vld [vmem:[#allocation3 + $0x60] ss:$36 sps:$4 sm:$0xff]   ;;  %v5181_v59 = vld [vmem:[%s6410_s5 + $0x210] sm:$0xff]  }
 0x4d7   :  { %2499 = vst [vmem:[#allocation3 + $0x5c] sm:$0xf] %v2491_v6  ;;  %v2620_v14 = vpop.permute.xlu0 %2619  ;;  %4681 = vmatpush3.bf16.msra.mxu0 %v5145_v7  ;;  %4706 = vmatprep.subr.bf16.mxu1 %v5150_v5  ;;  %v5182_v56 = vld [vmem:[%s6410_s5 + $0x208] sm:$0xff]   ;;  %v3788_v5 = vld [vmem:[%s6406_s10 + $0x78] sm:$0xff] }
 0x4d8   :  { %v2492_v13 = vsel %vm237_vm15, %v2484_v60, %v2488_v12  ;;  %v5151_v17 = vld [vmem:[#allocation3 + $0x50] ss:$36 sps:$4 sm:$0xff]   ;;  %v2627_v18 = vrot.slane %v2620_v14, 4  ;;  %4682 = vmatprep.subr.bf16.mxu0 %v5149_v46  ;;  %v5183_v60 = vld [vmem:[%s6410_s5 + $0x200] sm:$0xff]   ;;  %v3786_v6 = vld [vmem:[%s6406_s10 + $0x68] sm:$0xff] }
 0x4d9   :  { %2500 = vst [vmem:[#allocation3 + $0x80] sm:$0xf] %v2492_v13  ;;  %v2622_v20 = vpop.permute.xlu1 %2621  ;;  %3596 = vmatmul.mubr.bf16.gmra.mxu1 %v5151_v17  ;;  %v3787_v12 = vld [vmem:[%s6406_s10 + $0x70] sm:$0xff]  ;;  %v3780_v17 = vld [vmem:[%s6406_s10 + $0x38] sm:$0xff] }
 0x4da   :  { %v2628_v21 = vrot.slane %v2622_v20, 4  ;;  %v2631_v16 = vsel %vm184_vm14, %v2620_v14, %v2627_v18  ;;  %4707 = vmatpush3.bf16.msra.mxu1 %v5153_v8  ;;  %v3784_v8 = vld [vmem:[%s6406_s10 + $0x58] sm:$0xff]  ;;  %v3783_v13 = vld [vmem:[%s6406_s10 + $0x50] sm:$0xff]  ;;  %v3782_v14 = vld [vmem:[%s6406_s10 + $0x48] sm:$0xff] }
 0x4db   :  { %2639 = vst [vmem:[#allocation3 + $0x1c] sm:$0xf] %v2631_v16  ;;  %v2624_v19 = vpop.permute.xlu0 %2623  ;;  %4683 = vmatpush3.bf16.msra.mxu0 %v5152_v1  ;;  %4708 = vmatprep.subr.bf16.mxu1 %v5155_v53  ;;  %v3785_v1 = vld [vmem:[%s6406_s10 + $0x60] sm:$0xff]  ;;  %v3779_v18 = vld [vmem:[%s6406_s10 + $0x30] sm:$0xff]  ;;  %v3776_v53 = vld [vmem:[%s6406_s10 + $0x18] sm:$0xff] }
 0x4dc   :  { %v2632_v40 = vsel %vm184_vm14, %v2622_v20, %v2628_v21  ;;  %v2629_v25 = vrot.slane %v2624_v19, 4  ;;  %4684 = vmatprep.subr.bf16.mxu0 %v5154_v9  ;;  %v5173_v63 = vld [vmem:[#allocation3 + $0x58] ss:$36 sps:$4 sm:$0xff]   ;;  %v3778_v20 = vld [vmem:[%s6406_s10 + $0x28] sm:$0xff]  ;;  %v3777_v9 = vld [vmem:[%s6406_s10 + $0x20] sm:$0xff] }
 0x4dd   :  { %2640 = vst [vmem:[#allocation3 + $0x40] sm:$0xf] %v2632_v40  ;;  %v2626_v26 = vpop.permute.xlu1 %2625  ;;  %v3775_v21 = vld [vmem:[%s6406_s10 + $0x10] sm:$0xff]  ;;  %v3774_v16 = vld [vmem:[%s6406_s10 + $0x8] sm:$0xff]  ;;  %v3773_v40 = vld [vmem:[%s6406_s10] sm:$0xff] }
 0x4de   :  { %v2630_v28 = vrot.slane %v2626_v26, 4  ;;  %v2633_v29 = vsel %vm184_vm14, %v2624_v19, %v2629_v25  ;;  %4709 = vmatpush3.bf16.msra.mxu1 %v5157_v24 }
 0x4df   :  { %2641 = vst [vmem:[#allocation3 + $0x64] sm:$0xf] %v2633_v29  ;;  %v2716_v31 = vpop.permute.xlu0 %2715  ;;  %4685 = vmatpush3.bf16.msra.mxu0 %v5156_v23  ;;  %4710 = vmatprep.subr.bf16.mxu1 %v5159_v27 }
 0x4e0   :  { %v2634_v30 = vsel %vm184_vm14, %v2626_v26, %v2630_v28  ;;  %v2723_v34 = vrot.slane %v2716_v31, 4  ;;  %4686 = vmatprep.subr.bf16.mxu0 %v5158_v54  ;;  %v5167_v48 = vld [vmem:[#allocation3 + $0x5c] ss:$36 sps:$4 sm:$0xff]  }
 0x4e1   :  { %2642 = vst [vmem:[#allocation3 + $0x88] sm:$0xf] %v2634_v30  ;;  %v2718_v35 = vpop.permute.xlu1 %2717 }
 0x4e2   :  { %v2724_v39 = vrot.slane %v2718_v35, 4  ;;  %v2727_v10 = vsel %vm237_vm15, %v2716_v31, %v2723_v34  ;;  %4711 = vmatpush3.bf16.msra.mxu1 %v5161_v32 }
 0x4e3   :  { %2735 = vst [vmem:[#allocation3 + $0x20] sm:$0xf] %v2727_v10  ;;  %v2720_v42 = vpop.permute.xlu0 %2719  ;;  %4687 = vmatpush3.bf16.msra.mxu0 %v5160_v33  ;;  %4712 = vmatprep.subr.bf16.mxu1 %v5162_v55 }
 0x4e4   :  { %v2728_v41 = vsel %vm237_vm15, %v2718_v35, %v2724_v39  ;;  %v5165_v43 = vld [vmem:[#allocation3 + $0x1c] ss:$36 sps:$4 sm:$0xff]   ;;  %v2725_v45 = vrot.slane %v2720_v42, 4  ;;  %4886 = vmatprep.subr.bf16.mxu0 %v5166_v36 }
 0x4e5   :  { %2736 = vst [vmem:[#allocation3 + $0x44] sm:$0xf] %v2728_v41  ;;  %v2722_v11 = vpop.permute.xlu1 %2721  ;;  %3685 = vmatprep.mubr.bf16.mxu1 %v5165_v43 }
 0x4e6   :  { %v2726_v2 = vrot.slane %v2722_v11, 4  ;;  %v2729_v49 = vsel %vm237_vm15, %v2720_v42, %v2725_v45  ;;  %3637 = vmatmul.mubr.bf16.vlgmr.msra.gmra.mxu0 %v5141_v37  ;;  %4713 = vmatpush3.bf16.msra.mxu1 %v5169_v44 }
 0x4e7   :  { %2737 = vst [vmem:[#allocation3 + $0x68] sm:$0xf] %v2729_v49  ;;  %3644 = vmatprep.mubr.bf16.mxu0 %v5167_v48  ;;  %4887 = vmatpush3.bf16.msra.mxu0 %v5166_v36 }
 0x4e8   :  { %v2730_v3 = vsel %vm237_vm15, %v2722_v11, %v2726_v2  ;;  %4714 = vmatprep.subr.bf16.mxu1 %v5170_v47  ;;  %4888 = vmatprep.subr.bf16.mxu0 %v5171_v0  ;;  %v5175_v7 = vld [vmem:[#allocation3 + $0x64] ss:$36 sps:$4 sm:$0xff]  }
 0x4e9   :  { %2738 = vst [vmem:[#allocation3 + $0x8c] sm:$0xf] %v2730_v3 }
 0x4ea   :  { %4715 = vmatpush3.bf16.msra.mxu1 %v5172_v62  ;;  %v2981_v62 = vrot.slane %v6133_v52, %v5795_v38 }
 0x4eb   :  { %4889 = vmatpush3.bf16.msra.mxu0 %v5171_v0  ;;  %4906 = vmatprep.subr.mxu1 %v5191_v4 }
 0x4ec   :  { %v5177_v50 = vld [vmem:[#allocation3 + $0x20] ss:$36 sps:$4 sm:$0xff]   ;;  %4890 = vmatprep.subr.bf16.mxu0 %v5174_v22 }
 0x4ed   :  { %3686 = vmatmul.mubr.bf16.vlgmr.msra.gmra.mxu1 %v5163_v51 }
 0x4ee   :  { %3645 = vmatmul.mubr.bf16.gmra.mxu0 %v5173_v63  ;;  %3693 = vmatprep.mubr.bf16.mxu1 %v5175_v7 }
 0x4ef   :  { %4902 = vmatprep.mubr.bf16.mxu0 %v5177_v50  ;;  %4891 = vmatpush3.bf16.msra.mxu0 %v5174_v22 }
 0x4f0   :  { %4892 = vmatprep.subr.bf16.mxu0 %v5178_v57  ;;  %v5184_v46 = vld [vmem:[#allocation3 + $0x68] ss:$36 sps:$4 sm:$0xff]   ;;  %4907 = vmatpush3.msra.mxu1 %v3788_v5 }
 0x4f1   :  { %4908 = vmatprep.subr.mxu1 %v5191_v4 }
 0x4f2   :  { %4909 = vmatpush3.msra.mxu1 %v3787_v12 }
 0x4f3   :  { %4893 = vmatpush3.bf16.msra.mxu0 %v5178_v57  ;;  %4910 = vmatprep.subr.mxu1 %v5191_v4 }
 0x4f4   :  { %4894 = vmatprep.subr.bf16.mxu0 %v5180_v58  ;;  %4911 = vmatpush3.msra.mxu1 %v3786_v6 }
 0x4f5   :  { %3694 = vmatmul.mubr.bf16.gmra.mxu1 %v5179_v61  ;;  %4912 = vmatprep.subr.mxu1 %v5191_v4 }
 0x4f6   :  { %4938 = vmatprep.mubr.msk.f32.mxu1 %vm5193_vm8, %v5191_v4  ;;  %4913 = vmatpush3.msra.mxu1 %v3785_v1 }
 0x4f7   :  { %4895 = vmatpush3.bf16.msra.mxu0 %v5180_v58  ;;  %4914 = vmatprep.subr.mxu1 %v5191_v4 }
 0x4f8   :  { %4896 = vmatprep.subr.bf16.mxu0 %v5181_v59  ;;  %4915 = vmatpush3.msra.mxu1 %v3784_v8 }
 0x4f9   :  { %4916 = vmatprep.subr.mxu1 %v5191_v4 }
 0x4fa   :  { %4917 = vmatpush3.msra.mxu1 %v3783_v13 }
 0x4fb   :  { %4897 = vmatpush3.bf16.msra.mxu0 %v5181_v59  ;;  %4918 = vmatprep.subr.mxu1 %v5191_v4 }
 0x4fc   :  { %4898 = vmatprep.subr.bf16.mxu0 %v5182_v56  ;;  %4919 = vmatpush3.msra.mxu1 %v3782_v14 }
 0x4fd   :  { %4920 = vmatprep.subr.mxu1 %v5191_v4 }
 0x4fe   :  { %4921 = vmatpush3.msra.mxu1 %v3781_v15 }
 0x4ff   :  { %4899 = vmatpush3.bf16.msra.mxu0 %v5182_v56  ;;  %4922 = vmatprep.subr.mxu1 %v5191_v4 }
 0x500   :  { %4900 = vmatprep.subr.bf16.mxu0 %v5183_v60  ;;  %4923 = vmatpush3.msra.mxu1 %v3780_v17 }
 0x501   :  { %4924 = vmatprep.subr.mxu1 %v5191_v4 }
 0x502   :  { %4925 = vmatpush3.msra.mxu1 %v3779_v18 }
 0x503   :  { %4901 = vmatpush3.bf16.msra.mxu0 %v5183_v60  ;;  %4926 = vmatprep.subr.mxu1 %v5191_v4 }
 0x504   :  { %4941 = vmatprep.subr.mxu0 %v5191_v4  ;;  %4927 = vmatpush3.msra.mxu1 %v3778_v20 }
 0x505   :  { %4928 = vmatprep.subr.mxu1 %v5191_v4 }
 0x506   :  { %4903 = vmatmul.mubr.bf16.vlgmr.msra.gmra.mxu0 %v5184_v46  ;;  %4929 = vmatpush3.msra.mxu1 %v3777_v9 }
 0x507   :  { %4973 = vmatprep.mubr.msk.f32.mxu0 %vm5193_vm8, %v5191_v4  ;;  %4942 = vmatpush3.msra.mxu0 %v3788_v5 }
 0x508   :  { %4943 = vmatprep.subr.mxu0 %v5191_v4  ;;  %4930 = vmatprep.subr.mxu1 %v5191_v4 }
 0x509   :  { %4944 = vmatpush3.msra.mxu0 %v3787_v12  ;;  %4931 = vmatpush3.msra.mxu1 %v3776_v53 }
 0x50a   :  { %4945 = vmatprep.subr.mxu0 %v5191_v4  ;;  %4932 = vmatprep.subr.mxu1 %v5191_v4 }
 0x50b   :  { %4946 = vmatpush3.msra.mxu0 %v3786_v6  ;;  %4933 = vmatpush3.msra.mxu1 %v3775_v21 }
 0x50c   :  { %4947 = vmatprep.subr.mxu0 %v5191_v4  ;;  %4934 = vmatprep.subr.mxu1 %v5191_v4 }
 0x50d   :  { %4948 = vmatpush3.msra.mxu0 %v3785_v1  ;;  %4935 = vmatpush3.msra.mxu1 %v3774_v16 }
 0x50e   :  { %4949 = vmatprep.subr.mxu0 %v5191_v4  ;;  %4936 = vmatprep.subr.mxu1 %v5191_v4 }
 0x50f   :  { %4950 = vmatpush3.msra.mxu0 %v3784_v8  ;;  %4937 = vmatpush3.msra.mxu1 %v3773_v40 }
 0x510   :  { %4951 = vmatprep.subr.mxu0 %v5191_v4  ;;  %4976 = vmatprep.subr.mxu1 %v5191_v4 }
 0x511   :  { %4952 = vmatpush3.msra.mxu0 %v3783_v13 }
 0x512   :  { %4953 = vmatprep.subr.mxu0 %v5191_v4 }
 0x513   :  { %4954 = vmatpush3.msra.mxu0 %v3782_v14 }
 0x514   :  { %4955 = vmatprep.subr.mxu0 %v5191_v4 }
 0x515   :  { %4956 = vmatpush3.msra.mxu0 %v3781_v15 }
 0x516   :  { %4957 = vmatprep.subr.mxu0 %v5191_v4 }
 0x517   :  { %4958 = vmatpush3.msra.mxu0 %v3780_v17 }
 0x518   :  { %4959 = vmatprep.subr.mxu0 %v5191_v4 }
 0x519   :  { %4960 = vmatpush3.msra.mxu0 %v3779_v18 }
 0x51a   :  { %4961 = vmatprep.subr.mxu0 %v5191_v4 }
 0x51b   :  { %4962 = vmatpush3.msra.mxu0 %v3778_v20 }
 0x51c   :  { %4963 = vmatprep.subr.mxu0 %v5191_v4 }
 0x51d   :  { %4964 = vmatpush3.msra.mxu0 %v3777_v9 }
 0x51e   :  { %4965 = vmatprep.subr.mxu0 %v5191_v4 }
 0x51f   :  { %4966 = vmatpush3.msra.mxu0 %v3776_v53 }
 0x520   :  { %4967 = vmatprep.subr.mxu0 %v5191_v4 }
 0x521   :  { %4968 = vmatpush3.msra.mxu0 %v3775_v21 }
 0x522   :  { %4969 = vmatprep.subr.mxu0 %v5191_v4 }
 0x523   :  { %4970 = vmatpush3.msra.mxu0 %v3774_v16 }
 0x524   :  { %4971 = vmatprep.subr.mxu0 %v5191_v4 }
 0x525   :  { %4972 = vmatpush3.msra.mxu0 %v3773_v40 }
 0x586   :  { %v4632_v19 = vpop.f32.mrf.mxu0 }
 0x588   :  { %v4633_v23 = vpop.f32.mrf.mxu0 }
 0x589   :  { %v4634_v48 = vadd.f32 %v4633_v23, %v4632_v19 }
 0x58a   :  { %v4635_v25 = vpop.f32.mrf.mxu0 }
 0x58b   :  { %v3541_v57 = vadd.f32 %v4634_v48, %v2981_v62 }
 0x58c   :  { %v4636_v54 = vpop.f32.mrf.mxu0 }
 0x58d   :  { %v4660_v24 = vpop.f32.mrf.mxu1  ;;  %v4637_v0 = vadd.f32 %v4636_v54, %v4635_v25 }
 0x58e   :  { %v4638_v28 = vpop.f32.mrf.mxu0 }
 0x58f   :  { %v4661_v26 = vpop.f32.mrf.mxu1  ;;  %v3544_v61 = vadd.f32 %v4637_v0, %v2981_v62 }
 0x590   :  { %v4639_v30 = vpop.f32.mrf.mxu0  ;;  %v4662_v22 = vadd.f32 %v4661_v26, %v4660_v24 }
 0x591   :  { %v4663_v27 = vpop.f32.mrf.mxu1  ;;  %v4640_v49 = vadd.f32 %v4639_v30, %v4638_v28 }
 0x592   :  { %v4641_v33 = vpop.f32.mrf.mxu0  ;;  %v3590_v46 = vadd.f32 %v4662_v22, %v3541_v57  ;;  %v5190_v22 = vld [vmem:[%s6403_s9] sm:$0xff] }
 0x593   :  { %v4664_v29 = vpop.f32.mrf.mxu1  ;;  %v3549_v59 = vadd.f32 %v4640_v49, %v2981_v62 }
 0x594   :  { %v4642_v34 = vpop.f32.mrf.mxu0  ;;  %v4665_v51 = vadd.f32 %v4664_v29, %v4663_v27 }
 0x595   :  { %v4643_v50 = vadd.f32 %v4642_v34, %v4641_v33 }
 0x596   :  { %v3593_v8 = vadd.f32 %v4665_v51, %v3544_v61 }
 0x597   :  { %v3552_v1 = vadd.f32 %v4643_v50, %v2981_v62 }
 0x599   :  { %v4666_v31 = vpop.f32.mrf.mxu1 }
 0x59b   :  { %v4667_v32 = vpop.f32.mrf.mxu1 }
 0x59c   :  { %v4668_v63 = vadd.f32 %v4667_v32, %v4666_v31 }
 0x59d   :  { %v4669_v35 = vpop.f32.mrf.mxu1 }
 0x59e   :  { %v3598_v13 = vadd.f32 %v4668_v63, %v3549_v59 }
 0x59f   :  { %v4670_v36 = vpop.f32.mrf.mxu1 }
 0x5a0   :  { %v4671_v56 = vadd.f32 %v4670_v36, %v4669_v35 }
 0x5a2   :  { %v3601_v9 = vadd.f32 %v4671_v56, %v3552_v1 }
 0x5a6   :  { %v4688_v55 = vpop.f32.mrf.mxu0 }
 0x5a8   :  { %v4689_v39 = vpop.f32.mrf.mxu0 }
 0x5a9   :  { %v4690_v58 = vadd.f32 %v4689_v39, %v4688_v55 }
 0x5aa   :  { %v4691_v42 = vpop.f32.mrf.mxu0 }
 0x5ab   :  { %v3639_v15 = vadd.f32 %v4690_v58, %v3590_v46 }
 0x5ac   :  { %v4692_v44 = vpop.f32.mrf.mxu0 }
 0x5ad   :  { %v4716_v10 = vpop.f32.mrf.mxu1  ;;  %v4693_v5 = vadd.f32 %v4692_v44, %v4691_v42 }
 0x5ae   :  { %v4694_v45 = vpop.f32.mrf.mxu0 }
 0x5af   :  { %v4717_v41 = vpop.f32.mrf.mxu1  ;;  %v3642_v21 = vadd.f32 %v4693_v5, %v3593_v8 }
 0x5b0   :  { %v4695_v47 = vpop.f32.mrf.mxu0  ;;  %v4718_v6 = vadd.f32 %v4717_v41, %v4716_v10 }
 0x5b1   :  { %v4719_v43 = vpop.f32.mrf.mxu1  ;;  %v4696_v12 = vadd.f32 %v4695_v47, %v4694_v45 }
 0x5b2   :  { %v4697_v3 = vpop.f32.mrf.mxu0  ;;  %v3688_v19 = vadd.f32 %v4718_v6, %v3639_v15 }
 0x5b3   :  { %v4720_v37 = vpop.f32.mrf.mxu1  ;;  %v3647_v16 = vadd.f32 %v4696_v12, %v3598_v13  ;;  %v3937_v12 = vld [vmem:[%s6412_s8] sm:$0x1] }
 0x5b4   :  { %v4698_v60 = vpop.f32.mrf.mxu0  ;;  %v4721_v18 = vadd.f32 %v4720_v37, %v4719_v43 }
 0x5b5   :  { %v4722_v11 = vpop.f32.mrf.mxu1  ;;  %v4699_v17 = vadd.f32 %v4698_v60, %v4697_v3  ;;  %v3933_v60 = vld [vmem:[%s6411_s7] sm:$0x1] }
 0x5b6   :  { %v3691_v54 = vadd.f32 %v4721_v18, %v3642_v21  ;;  %v4104_v21 = vld [vmem:[%s6402_s0 + $0x10] sm:$0xff] }
 0x5b7   :  { %v4723_v2 = vpop.f32.mrf.mxu1  ;;  %v3650_v24 = vadd.f32 %v4699_v17, %v3601_v9 }
 0x5b8   :  { %v4724_v20 = vadd.f32 %v4723_v2, %v4722_v11 }
 0x5b9   :  { %v4725_v7 = vpop.f32.mrf.mxu1 }
 0x5ba   :  { %v3696_v25 = vadd.f32 %v4724_v20, %v3647_v16  ;;  %v4105_v16 = vld [vmem:[%s6402_s0 + $0x18] sm:$0xff] }
 0x5bb   :  { %v4726_v14 = vpop.f32.mrf.mxu1 }
 0x5bc   :  { %v4727_v40 = vadd.f32 %v4726_v14, %v4725_v7 }
 0x5be   :  { %v3699_v29 = vadd.f32 %v4727_v40, %v3650_v24 }
 0x5c6   :  { %v4904_v52 = vpop.f32.mrf.mxu0 }
 0x5c7   :  { %v3745_v28 = vadd.f32 %v4904_v52, %v3696_v25 }
 0x5c8   :  { %v3736_v53 = vpop.f32.mrf.mxu0 }
 0x5c9   :  { %v3737_v26 = vadd.f32 %v3736_v53, %v3688_v19  ;;  %v3762_v35 = vmul.f32 %v3745_v28, %v3745_v28  ;;  %v4102_v53 = vld [vmem:[%s6402_s0] sm:$0xff] }
 0x5ca   :  { %v4905_v23 = vpop.f32.mrf.mxu0 }
 0x5cb   :  { %v3760_v31 = vmul.f32 %v3737_v26, %v3737_v26  ;;  %v3748_v33 = vadd.f32 %v4905_v23, %v3699_v29 }
 0x5cc   :  { %v3739_v27 = vpop.f32.mrf.mxu0 }
 0x5cd   :  { %v3740_v30 = vadd.f32 %v3739_v27, %v3691_v54  ;;  %v3763_v39 = vmul.f32 %v3748_v33, %v3748_v33 }
 0x5cf   :  { %v3751_v32 = vadd.f32 %v3740_v30, %v3737_v26  ;;  %v3761_v34 = vmul.f32 %v3740_v30, %v3740_v30 }
 0x5d1   :  { %v3752_v55 = vadd.f32 %v3751_v32, %v3745_v28  ;;  %v3764_v36 = vadd.f32 %v3761_v34, %v3760_v31 }
 0x5d3   :  { %v3753_v10 = vadd.f32 %v3752_v55, %v3748_v33  ;;  %v3765_v41 = vadd.f32 %v3764_v36, %v3762_v35 }
 0x5d5   :  { %v3754_v42 = vrot.slane %v3753_v10, 4  ;;  %v3766_v43 = vadd.f32 %v3765_v41, %v3763_v39 }
 0x5d7   :  { %v3755_v44 = vadd.f32 %v3754_v42, %v3753_v10  ;;  %v3767_v37 = vrot.slane %v3766_v43, 4 }
 0x5d9   :  { %v3756_v45 = vrot.slane %v3755_v44, 2  ;;  %v3768_v11 = vadd.f32 %v3767_v37, %v3766_v43 }
 0x5db   :  { %v3757_v47 = vadd.f32 %v3756_v45, %v3755_v44  ;;  %v3769_v2 = vrot.slane %v3768_v11, 2 }
 0x5dd   :  { %v3758_v48 = vrot.slane %v3757_v47, 1  ;;  %v3770_v0 = vadd.f32 %v3769_v2, %v3768_v11 }
 0x5df   :  { %v3759_v49 = vadd.f32 %v3758_v48, %v3757_v47  ;;  %v3771_v3 = vrot.slane %v3770_v0, 1 }
 0x5e1   :  { %4939 = vmatmul.mubr.f32.vlgmr.msra.gmra.mxu1 %v3759_v49  ;;  %v3772_v62 = vadd.f32 %v3771_v3, %v3770_v0 }
 0x5e2   :  { %4977 = vmatpush3.msra.mxu1 %v5190_v22  ;;  %4978 = vmatprep.mubr.msk.f32.mxu1 %vm5193_vm8, %v5191_v4 }
 0x5e3   :  { %4974 = vmatmul.mubr.f32.vlgmr.msra.gmra.mxu0 %v3772_v62  ;;  %4981 = vmatprep.subr.mxu1 %v5191_v4 }
 0x6a1   :  { %v3855_v50 = vpop.f32.mrf.mxu1 }
 0x6a2   :  { %v3929_v51 = vmul.f32 0.001953125, %v3855_v50 }
 0x6a3   :  { %v4940_v63 = vpop.f32.mrf.mxu1  ;;  %v3925_v7 = vpop.f32.mrf.mxu0 }
 0x6a4   :  { %v3931_v57 = vmul.f32 %v3929_v51, %v3929_v51  ;;  %v3930_v58 = vmul.f32 0.001953125, %v3925_v7 }
 0x6a5   :  { %v4975_v61 = vpop.f32.mrf.mxu0 }
 0x6a6   :  { %v3932_v59 = vsub.f32 %v3930_v58, %v3931_v57 }
 0x6a8   :  { %v3934_v56 = vadd.f32 1e-05, %v3932_v59 }
 0x6aa   :  { %5187 = vrsqrt.f32 %v3934_v56 }
 0x6b7   :  { %v5188_v46 = vpop.eup %5187 }
 0x6b8   :  { %v3936_v5 = vmul.f32 %v5188_v46, %v3933_v60 }
 0x6ba   :  { %4979 = vmatmul.mubr.msk.f32.vlgmr.msra.gmra.mxu1 %vm56_vm3, %v3936_v5  ;;  %v3938_v6 = vmul.f32 %v3936_v5, %v3929_v51 }
 0x6bb   :  { %4982 = vmatpush3.msra.mxu1 %v5190_v22  ;;  %4983 = vmatprep.mubr.msk.f32.mxu1 %vm5193_vm8, %v5191_v4  ;;  %v4103_v4 = vld [vmem:[%s6402_s0 + $0x8] sm:$0xff] }
 0x6bc   :  { %v3939_v1 = vsub.f32 %v3937_v12, %v3938_v6 }
 0x6be   :  { %4984 = vmatmul.mubr.msk.f32.vlgmr.msra.gmra.mxu1 %vm56_vm3, %v3939_v1 }
 0x77a   :  { %v4009_v8 = vpop.f32.mrf.mxu1 }
 0x77b   :  { %v4089_v13 = vrot.slane %v4009_v8, %v5795_v38 }
 0x77c   :  { %v4980_v14 = vpop.f32.mrf.mxu1 }
 0x77d   :  { %v4090_v52 = vmul.f32 %v4089_v13, %v3737_v26  ;;  %v4091_v17 = vmul.f32 %v4089_v13, %v3740_v30  ;;  %v4092_v18 = vmul.f32 %v4089_v13, %v3745_v28  ;;  %v4093_v20 = vmul.f32 %v4089_v13, %v3748_v33 }
 0x77e   :  { %v4082_v15 = vpop.f32.mrf.mxu1 }
 0x77f   :  { %v4097_v9 = vrot.slane %v4082_v15, %v5795_v38 }
 0x780   :  { %v4985_v40 = vpop.f32.mrf.mxu1 }
 0x781   :  { %v4098_v19 = vadd.f32 %v4097_v9, %v4090_v52  ;;  %v4099_v23 = vadd.f32 %v4097_v9, %v4091_v17  ;;  %v4100_v38 = vadd.f32 %v4097_v9, %v4092_v18  ;;  %v4101_v24 = vadd.f32 %v4097_v9, %v4093_v20 }
 0x783   :  { %v4106_v25 = vadd.f32 %v4102_v53, %v4098_v19  ;;  %v4107_v26 = vadd.f32 %v4103_v4, %v4099_v23  ;;  %v4108_v54 = vadd.f32 %v4104_v21, %v4100_v38  ;;  %v4109_v27 = vadd.f32 %v4105_v16, %v4101_v24 }
 0x785   :  { %v4110_v28 = vmax.f32 %v4106_v25, 0.0  ;;  %v4111_v29 = vmax.f32 %v4107_v26, 0.0  ;;  %v4112_v30 = vmax.f32 %v4108_v54, 0.0  ;;  %v4113_v31 = vmax.f32 %v4109_v27, 0.0 }
 0x787   :  { %4114 = vst [vmem:[%s6413_s11] sm:$0xff] %v4110_v28  ;;  %4115 = vst [vmem:[%s6413_s11 + $0x8] sm:$0xff] %v4111_v29 }
 0x788   :  { %4116 = vst [vmem:[%s6413_s11 + $0x10] sm:$0xff] %v4112_v30  ;;  %4117 = vst [vmem:[%s6413_s11 + $0x18] sm:$0xff] %v4113_v31 }

</bundles_post_ra>
